<compile_context>
chip_gen: v7x
topology: tpu7x:2x2x1
jax: 0.10.0
libtpu: 0.0.40
codegen_flags: <defaults>
</compile_context>

<pallas_src>
import math
import jax
import jax.numpy as jnp
from jax.experimental import pallas as pl
from jax.experimental.pallas import tpu as pltpu

# ---- model sizes ----
N_EMB = 64
INPUT_DIM = 16
HIDDEN = 32              # hidden_dim
E = 2 * HIDDEN           # MHA embed dim = 64
NUM_HEADS = 8
HEAD_DIM = E // NUM_HEADS
OUTPUT_DIM = 4
BATCH = 8                # rows the attention mixes over (seq axis of the MHA)
N_SAMPLES = 4            # independent samples, flattened into the kernel's row dimension
NEG_INF = -1e30


def multihead_kernel(
    x_ref,          # (NB, INPUT_DIM)   all samples, rows flattened
    mask_ref,       # (NB, NB)          block-diagonal additive mask (0 / -1e30)
    w_g_ref,        # (INPUT_DIM, 6H)   fc_input folded into fwd+bwd LSTM gates (f dropped)
    w_qkv_ref,      # (E, 3E)           q columns pre-scaled by 1/sqrt(head_dim)
    w_h1_ref,       # (E, 256)          attn out_proj folded into fc1
    w2_ref,         # (256, 64)
    w3_ref,         # (64, OUTPUT_DIM)
    b_ref,          # (5, 256)          packed biases [gates, qkv, h1, b2, b3]
    out_ref,        # (NB, OUTPUT_DIM)
):
    f32 = jnp.float32
    nb = x_ref.shape[0]
    x = x_ref[...]                                         # (NB, INPUT_DIM)
    biases = b_ref[...]

    # --- fused fc_input + 1-step bidirectional LSTM (h0 = c0 = 0, f-gate unused) ---
    gates = jnp.dot(x, w_g_ref[...], preferred_element_type=f32) + biases[0:1, 0:3 * E]
    i = jax.nn.sigmoid(gates[:, 0:E])                      # [i_fwd | i_bwd]
    g = jnp.tanh(gates[:, E:2 * E])                        # [g_fwd | g_bwd]
    o = jax.nn.sigmoid(gates[:, 2 * E:3 * E])              # [o_fwd | o_bwd]
    lstm_out = o * jnp.tanh(i * g)                         # (NB, E) = [h_fwd | h_bwd]

    # --- multi-head self-attention, all samples at once via a block-diagonal mask ---
    qkv = jnp.dot(lstm_out, w_qkv_ref[...], preferred_element_type=f32) + biases[1:2, 0:3 * E]
    q = qkv[:, 0:E].reshape(nb, NUM_HEADS, HEAD_DIM)       # already scaled by 1/sqrt(head_dim)
    k = qkv[:, E:2 * E].reshape(nb, NUM_HEADS, HEAD_DIM)
    v = qkv[:, 2 * E:3 * E].reshape(nb, NUM_HEADS, HEAD_DIM)

    scores = jnp.einsum("qhd,khd->hqk", q, k, preferred_element_type=f32)   # (H, NB, NB)
    scores = scores + mask_ref[...][None, :, :]            # -1e30 across samples
    scores = scores - jnp.max(scores, axis=-1, keepdims=True)
    p = jnp.exp(scores)                                    # masked entries underflow to 0
    p = p * pl.reciprocal(jnp.sum(p, axis=-1, keepdims=True), approx=True)
    ctx = jnp.einsum("hqk,khd->qhd", p, v, preferred_element_type=f32)      # (NB, H, D)
    ctx = ctx.reshape(nb, E)

    # --- out_proj folded into fc1, then fc2, fc3 (dropout = identity in eval) ---
    h1 = jnp.maximum(jnp.dot(ctx, w_h1_ref[...], preferred_element_type=f32) + biases[2:3, :], 0.0)
    h2 = jnp.maximum(jnp.dot(h1, w2_ref[...], preferred_element_type=f32) + biases[3:4, 0:64], 0.0)
    out_ref[...] = jnp.dot(h2, w3_ref[...], preferred_element_type=f32) + biases[4:5, 0:OUTPUT_DIM]


# ---------------- parameters (PyTorch-equivalent layout, weights pre-transposed) ----------------
def init_params(key):
    def uni(key, shape, fan_in):
        kk = 1.0 / math.sqrt(fan_in)
        return jax.random.uniform(key, shape, jnp.float32, -kk, kk)

    keys = jax.random.split(key, 20)
    p = {}
    p["w_in"] = uni(keys[0], (INPUT_DIM, N_EMB), INPUT_DIM)
    p["b_in"] = uni(keys[1], (1, N_EMB), INPUT_DIM)
    # LSTM W_ih (4H, 64) -> transposed; gate row order i,f,g,o; bias = b_ih + b_hh
    p["w_ihf"] = uni(keys[2], (N_EMB, 4 * HIDDEN), HIDDEN)
    p["b_f"] = uni(keys[3], (1, 4 * HIDDEN), HIDDEN) + uni(keys[4], (1, 4 * HIDDEN), HIDDEN)
    p["w_ihb"] = uni(keys[5], (N_EMB, 4 * HIDDEN), HIDDEN)
    p["b_b"] = uni(keys[6], (1, 4 * HIDDEN), HIDDEN) + uni(keys[7], (1, 4 * HIDDEN), HIDDEN)
    # MHA in_proj / out_proj (biases zero-init in PyTorch)
    p["w_qkv"] = uni(keys[8], (E, 3 * E), E)
    p["b_qkv"] = jnp.zeros((1, 3 * E), jnp.float32)
    p["w_o"] = uni(keys[9], (E, E), E)
    p["b_o"] = jnp.zeros((1, E), jnp.float32)
    # MLP head
    p["w1"] = uni(keys[10], (E, 256), E)
    p["b1"] = uni(keys[11], (1, 256), E)
    p["w2"] = uni(keys[12], (256, 64), 256)
    p["b2"] = uni(keys[13], (1, 64), 256)
    p["w3"] = uni(keys[14], (64, OUTPUT_DIM), 64)
    p["b3"] = uni(keys[15], (1, OUTPUT_DIM), 64)
    return p


def fuse_params(p):
    """Offline (f32, HIGHEST precision) affine compositions feeding the kernel."""
    hp = jax.lax.Precision.HIGHEST
    H = HIDDEN

    def igo(a):   # pick i, g, o columns of a (., 4H) tensor (drop f)
        return a[:, 0:H], a[:, 2 * H:3 * H], a[:, 3 * H:4 * H]

    i_f, g_f, o_f = igo(p["w_ihf"])
    i_b, g_b, o_b = igo(p["w_ihb"])
    w_gate = jnp.concatenate([i_f, i_b, g_f, g_b, o_f, o_b], axis=1)        # (N_EMB, 6H)
    bi_f, bg_f, bo_f = igo(p["b_f"])
    bi_b, bg_b, bo_b = igo(p["b_b"])
    b_gate = jnp.concatenate([bi_f, bi_b, bg_f, bg_b, bo_f, bo_b], axis=1)  # (1, 6H)

    w_g = jnp.dot(p["w_in"], w_gate, precision=hp)                          # (INPUT_DIM, 6H)
    b_g = jnp.dot(p["b_in"], w_gate, precision=hp) + b_gate                 # (1, 6H)

    # fold q-scale into the q columns of the in_proj
    scale = 1.0 / math.sqrt(HEAD_DIM)
    col_scale = jnp.concatenate(
        [jnp.full((1, E), scale, jnp.float32), jnp.ones((1, 2 * E), jnp.float32)], axis=1)
    w_qkv = p["w_qkv"] * col_scale
    b_qkv = p["b_qkv"] * col_scale

    # fold MHA out_proj into fc1
    w_h1 = jnp.dot(p["w_o"], p["w1"], precision=hp)                         # (E, 256)
    b_h1 = jnp.dot(p["b_o"], p["w1"], precision=hp) + p["b1"]               # (1, 256)

    def pad_row(b):
        return jnp.pad(b, ((0, 0), (0, 256 - b.shape[1])))

    biases = jnp.concatenate(
        [pad_row(b_g), pad_row(b_qkv), pad_row(b_h1), pad_row(p["b2"]), pad_row(p["b3"])],
        axis=0)                                                             # (5, 256)

    return {"w_g": w_g, "w_qkv": w_qkv, "w_h1": w_h1,
            "w2": p["w2"], "w3": p["w3"], "biases": biases}


# ---------------- pallas_call wrapper: single invocation, all samples flattened ----------------
_VMEM_SPEC = pl.BlockSpec(memory_space=pltpu.MemorySpace.VMEM)


@jax.jit
def multihead_forward(texts, fused):
    """texts: (N, BATCH, INPUT_DIM) independent samples -> (N, BATCH, OUTPUT_DIM)."""
    n, b, d = texts.shape
    nb = n * b
    x2d = texts.reshape(nb, d)

    # block-diagonal additive mask: 0 within a sample, -1e30 across samples (constant-folded)
    sample_id = jnp.arange(nb, dtype=jnp.int32) // b
    mask = jnp.where(sample_id[:, None] == sample_id[None, :], 0.0, NEG_INF).astype(jnp.float32)

    out = pl.pallas_call(
        multihead_kernel,
        out_shape=jax.ShapeDtypeStruct((nb, OUTPUT_DIM), jnp.float32),
        in_specs=[_VMEM_SPEC] * 8,
        out_specs=_VMEM_SPEC,
    )(x2d, mask, fused["w_g"], fused["w_qkv"], fused["w_h1"],
      fused["w2"], fused["w3"], fused["biases"])
    return out.reshape(n, b, OUTPUT_DIM)


# ---------------- pure-JAX reference (un-fused, HIGHEST precision) ----------------
def reference_forward(text, p):
    hp = jax.lax.Precision.HIGHEST
    emb = jnp.dot(text, p["w_in"], precision=hp) + p["b_in"]

    def lstm_dir(w, b):
        g = jnp.dot(emb, w, precision=hp) + b
        i = jax.nn.sigmoid(g[:, :HIDDEN])
        gg = jnp.tanh(g[:, 2 * HIDDEN:3 * HIDDEN])
        o = jax.nn.sigmoid(g[:, 3 * HIDDEN:])
        return o * jnp.tanh(i * gg)

    lstm_out = jnp.concatenate([lstm_dir(p["w_ihf"], p["b_f"]),
                                lstm_dir(p["w_ihb"], p["b_b"])], axis=-1)
    qkv = jnp.dot(lstm_out, p["w_qkv"], precision=hp) + p["b_qkv"]
    q, k, v = qkv[:, :E], qkv[:, E:2 * E], qkv[:, 2 * E:]
    B = text.shape[0]
    qh = q.reshape(B, NUM_HEADS, HEAD_DIM) / math.sqrt(HEAD_DIM)
    kh = k.reshape(B, NUM_HEADS, HEAD_DIM)
    vh = v.reshape(B, NUM_HEADS, HEAD_DIM)
    scores = jnp.einsum("qhd,khd->hqk", qh, kh, precision=hp)
    pattn = jax.nn.softmax(scores, axis=-1)
    ctx = jnp.einsum("hqk,khd->qhd", pattn, vh, precision=hp).reshape(B, E)
    attn = jnp.dot(ctx, p["w_o"], precision=hp) + p["b_o"]
    h1 = jax.nn.relu(jnp.dot(attn, p["w1"], precision=hp) + p["b1"])
    h2 = jax.nn.relu(jnp.dot(h1, p["w2"], precision=hp) + p["b2"])
    return jnp.dot(h2, p["w3"], precision=hp) + p["b3"]


if __name__ == "__main__":
    key = jax.random.PRNGKey(0)
    k_param, k_x = jax.random.split(key)
    params = init_params(k_param)
    fused = fuse_params(params)           # f32 offline fusion (exact affine composition)

    texts = jax.random.normal(k_x, (N_SAMPLES, BATCH, INPUT_DIM), jnp.float32)

    out = multihead_forward(texts, fused)
    out = jax.block_until_ready(out)
    assert out.shape == (N_SAMPLES, BATCH, OUTPUT_DIM)

    ref = jnp.stack([reference_forward(texts[i], params) for i in range(N_SAMPLES)])
    assert jnp.allclose(out, ref, rtol=1e-2, atol=1e-2), (out, ref)

    # TODO(synk): nn.Dropout train-mode masking not implemented (eval-mode identity only).
    print("KERNEL_OK")
</pallas_src>

<mosaic_0001>
module attributes {stable_mosaic.version = 11 : i64} {
  func.func @multihead_kernel(%arg0: memref<32x16xf32, #tpu.memory_space<vmem>>, %arg1: memref<32x32xf32, #tpu.memory_space<vmem>>, %arg2: memref<16x192xf32, #tpu.memory_space<vmem>>, %arg3: memref<64x192xf32, #tpu.memory_space<vmem>>, %arg4: memref<64x256xf32, #tpu.memory_space<vmem>>, %arg5: memref<256x64xf32, #tpu.memory_space<vmem>>, %arg6: memref<64x4xf32, #tpu.memory_space<vmem>>, %arg7: memref<5x256xf32, #tpu.memory_space<vmem>>, %arg8: memref<32x4xf32, #tpu.memory_space<vmem>>) attributes {dimension_semantics = [], scalar_prefetch = 0 : i64, scratch_operands = 0 : i64, tpu.core_type = #tpu.core_type<tc>} {
    %c0 = arith.constant 0 : index
    %c0_0 = arith.constant 0 : index
    %0 = vector.load %arg0[%c0, %c0_0] : memref<32x16xf32, #tpu.memory_space<vmem>>, vector<32x16xf32>
    %c0_1 = arith.constant 0 : index
    %c0_2 = arith.constant 0 : index
    %1 = vector.load %arg7[%c0_1, %c0_2] : memref<5x256xf32, #tpu.memory_space<vmem>>, vector<5x256xf32>
    %c0_3 = arith.constant 0 : index
    %c0_4 = arith.constant 0 : index
    %2 = vector.load %arg2[%c0_3, %c0_4] : memref<16x192xf32, #tpu.memory_space<vmem>>, vector<16x192xf32>
    %cst = arith.constant dense<0.000000e+00> : vector<32x192xf32>
    %3 = tpu.matmul %0, %2, %cst {dimension_numbers = #tpu.dot_dimension_numbers<[1], [0], [0], [1], [0, 0, 1, 1], [], []>} : vector<32x16xf32>, vector<16x192xf32>, vector<32x192xf32> -> vector<32x192xf32>
    %4 = vector.extract_strided_slice %1 {offsets = [0, 0], sizes = [1, 192], strides = [1, 1]} : vector<5x256xf32> to vector<1x192xf32>
    %5 = vector.broadcast %4 : vector<1x192xf32> to vector<32x192xf32>
    %6 = arith.addf %3, %5 : vector<32x192xf32>
    %7 = vector.extract_strided_slice %6 {offsets = [0, 0], sizes = [32, 64], strides = [1, 1]} : vector<32x192xf32> to vector<32x64xf32>
    %8 = arith.negf %7 : vector<32x64xf32>
    %9 = math.exp %8 : vector<32x64xf32>
    %cst_5 = arith.constant 1.000000e+00 : f32
    %10 = vector.broadcast %cst_5 : f32 to vector<32x64xf32>
    %11 = arith.addf %10, %9 : vector<32x64xf32>
    %12 = arith.divf %10, %11 : vector<32x64xf32>
    %13 = vector.extract_strided_slice %6 {offsets = [0, 64], sizes = [32, 64], strides = [1, 1]} : vector<32x192xf32> to vector<32x64xf32>
    %14 = math.tanh %13 : vector<32x64xf32>
    %15 = vector.extract_strided_slice %6 {offsets = [0, 128], sizes = [32, 64], strides = [1, 1]} : vector<32x192xf32> to vector<32x64xf32>
    %16 = arith.negf %15 : vector<32x64xf32>
    %17 = math.exp %16 : vector<32x64xf32>
    %cst_6 = arith.constant 1.000000e+00 : f32
    %18 = vector.broadcast %cst_6 : f32 to vector<32x64xf32>
    %19 = arith.addf %18, %17 : vector<32x64xf32>
    %20 = arith.divf %18, %19 : vector<32x64xf32>
    %21 = arith.mulf %12, %14 : vector<32x64xf32>
    %22 = math.tanh %21 : vector<32x64xf32>
    %23 = arith.mulf %20, %22 : vector<32x64xf32>
    %c0_7 = arith.constant 0 : index
    %c0_8 = arith.constant 0 : index
    %24 = vector.load %arg3[%c0_7, %c0_8] : memref<64x192xf32, #tpu.memory_space<vmem>>, vector<64x192xf32>
    %cst_9 = arith.constant dense<0.000000e+00> : vector<32x192xf32>
    %25 = tpu.matmul %23, %24, %cst_9 {dimension_numbers = #tpu.dot_dimension_numbers<[1], [0], [0], [1], [0, 0, 1, 1], [], []>} : vector<32x64xf32>, vector<64x192xf32>, vector<32x192xf32> -> vector<32x192xf32>
    %26 = vector.extract_strided_slice %1 {offsets = [1, 0], sizes = [1, 192], strides = [1, 1]} : vector<5x256xf32> to vector<1x192xf32>
    %27 = vector.broadcast %26 : vector<1x192xf32> to vector<32x192xf32>
    %28 = arith.addf %25, %27 : vector<32x192xf32>
    %29 = vector.extract_strided_slice %28 {offsets = [0, 0], sizes = [32, 64], strides = [1, 1]} : vector<32x192xf32> to vector<32x64xf32>
    %30 = vector.shape_cast %29 : vector<32x64xf32> to vector<32x8x8xf32>
    %31 = vector.extract_strided_slice %28 {offsets = [0, 64], sizes = [32, 64], strides = [1, 1]} : vector<32x192xf32> to vector<32x64xf32>
    %32 = vector.shape_cast %31 : vector<32x64xf32> to vector<32x8x8xf32>
    %33 = vector.extract_strided_slice %28 {offsets = [0, 128], sizes = [32, 64], strides = [1, 1]} : vector<32x192xf32> to vector<32x64xf32>
    %34 = vector.shape_cast %33 : vector<32x64xf32> to vector<32x8x8xf32>
    "tpu.trace_start"() <{level = 10 : i32, message = "qhd,khd->hqk"}> : () -> ()
    %cst_10 = arith.constant dense<0.000000e+00> : vector<8x32x32xf32>
    %35 = tpu.matmul %30, %32, %cst_10 {dimension_numbers = #tpu.dot_dimension_numbers<[2], [2], [0], [0], [0, 1, 0, 0, 1, 0], [1], [1]>} : vector<32x8x8xf32>, vector<32x8x8xf32>, vector<8x32x32xf32> -> vector<8x32x32xf32>
    "tpu.trace_stop"() : () -> ()
    %c0_11 = arith.constant 0 : index
    %c0_12 = arith.constant 0 : index
    %36 = vector.load %arg1[%c0_11, %c0_12] : memref<32x32xf32, #tpu.memory_space<vmem>>, vector<32x32xf32>
    %37 = vector.shape_cast %36 : vector<32x32xf32> to vector<1x32x32xf32>
    %38 = vector.broadcast %37 : vector<1x32x32xf32> to vector<8x32x32xf32>
    %39 = arith.addf %35, %38 : vector<8x32x32xf32>
    %cst_13 = arith.constant dense<0xFF800000> : vector<8x32xf32>
    %40 = vector.multi_reduction <maximumf>, %39, %cst_13 [2] : vector<8x32x32xf32> to vector<8x32xf32>
    %41 = vector.shape_cast %40 : vector<8x32xf32> to vector<8x32x1xf32>
    %42 = vector.broadcast %41 : vector<8x32x1xf32> to vector<8x32x32xf32>
    %43 = arith.subf %39, %42 : vector<8x32x32xf32>
    %44 = math.exp %43 : vector<8x32x32xf32>
    %cst_14 = arith.constant dense<0.000000e+00> : vector<8x32xf32>
    %45 = vector.multi_reduction <add>, %44, %cst_14 [2] : vector<8x32x32xf32> to vector<8x32xf32>
    %46 = vector.shape_cast %45 : vector<8x32xf32> to vector<8x32x1xf32>
    %47 = tpu.reciprocal %46 {approx = true} : vector<8x32x1xf32> -> vector<8x32x1xf32>
    %48 = vector.broadcast %47 : vector<8x32x1xf32> to vector<8x32x32xf32>
    %49 = arith.mulf %44, %48 : vector<8x32x32xf32>
    "tpu.trace_start"() <{level = 10 : i32, message = "hqk,khd->qhd"}> : () -> ()
    %cst_15 = arith.constant dense<0.000000e+00> : vector<8x8x32xf32>
    %50 = tpu.matmul %34, %49, %cst_15 {dimension_numbers = #tpu.dot_dimension_numbers<[0], [2], [2], [1], [0, 1, 0, 2, 1, 1], [1], [0]>} : vector<32x8x8xf32>, vector<8x32x32xf32>, vector<8x8x32xf32> -> vector<8x8x32xf32>
    %51 = tpu.transpose %50, [2, 0, 1] : vector<8x8x32xf32> -> vector<32x8x8xf32>
    "tpu.trace_stop"() : () -> ()
    %52 = vector.shape_cast %51 : vector<32x8x8xf32> to vector<32x64xf32>
    %c0_16 = arith.constant 0 : index
    %c0_17 = arith.constant 0 : index
    %53 = vector.load %arg4[%c0_16, %c0_17] : memref<64x256xf32, #tpu.memory_space<vmem>>, vector<64x256xf32>
    %cst_18 = arith.constant dense<0.000000e+00> : vector<32x256xf32>
    %54 = tpu.matmul %52, %53, %cst_18 {dimension_numbers = #tpu.dot_dimension_numbers<[1], [0], [0], [1], [0, 0, 1, 1], [], []>} : vector<32x64xf32>, vector<64x256xf32>, vector<32x256xf32> -> vector<32x256xf32>
    %55 = vector.extract_strided_slice %1 {offsets = [2, 0], sizes = [1, 256], strides = [1, 1]} : vector<5x256xf32> to vector<1x256xf32>
    %56 = vector.broadcast %55 : vector<1x256xf32> to vector<32x256xf32>
    %57 = arith.addf %54, %56 : vector<32x256xf32>
    %cst_19 = arith.constant 0.000000e+00 : f32
    %58 = vector.broadcast %cst_19 : f32 to vector<32x256xf32>
    %59 = arith.maximumf %57, %58 : vector<32x256xf32>
    %c0_20 = arith.constant 0 : index
    %c0_21 = arith.constant 0 : index
    %60 = vector.load %arg5[%c0_20, %c0_21] : memref<256x64xf32, #tpu.memory_space<vmem>>, vector<256x64xf32>
    %cst_22 = arith.constant dense<0.000000e+00> : vector<32x64xf32>
    %61 = tpu.matmul %59, %60, %cst_22 {dimension_numbers = #tpu.dot_dimension_numbers<[1], [0], [0], [1], [0, 0, 1, 1], [], []>} : vector<32x256xf32>, vector<256x64xf32>, vector<32x64xf32> -> vector<32x64xf32>
    %62 = vector.extract_strided_slice %1 {offsets = [3, 0], sizes = [1, 64], strides = [1, 1]} : vector<5x256xf32> to vector<1x64xf32>
    %63 = vector.broadcast %62 : vector<1x64xf32> to vector<32x64xf32>
    %64 = arith.addf %61, %63 : vector<32x64xf32>
    %cst_23 = arith.constant 0.000000e+00 : f32
    %65 = vector.broadcast %cst_23 : f32 to vector<32x64xf32>
    %66 = arith.maximumf %64, %65 : vector<32x64xf32>
    %c0_24 = arith.constant 0 : index
    %c0_25 = arith.constant 0 : index
    %67 = vector.load %arg6[%c0_24, %c0_25] : memref<64x4xf32, #tpu.memory_space<vmem>>, vector<64x4xf32>
    %cst_26 = arith.constant dense<0.000000e+00> : vector<32x4xf32>
    %68 = tpu.matmul %66, %67, %cst_26 {dimension_numbers = #tpu.dot_dimension_numbers<[1], [0], [0], [1], [0, 0, 1, 1], [], []>} : vector<32x64xf32>, vector<64x4xf32>, vector<32x4xf32> -> vector<32x4xf32>
    %69 = vector.extract_strided_slice %1 {offsets = [4, 0], sizes = [1, 4], strides = [1, 1]} : vector<5x256xf32> to vector<1x4xf32>
    %70 = vector.broadcast %69 : vector<1x4xf32> to vector<32x4xf32>
    %71 = arith.addf %68, %70 : vector<32x4xf32>
    %c0_27 = arith.constant 0 : index
    %c0_28 = arith.constant 0 : index
    %72 = vector.load %arg8[%c0_27, %c0_28] : memref<32x4xf32, #tpu.memory_space<vmem>>, vector<32x4xf32>
    tpu.vector_store %arg8[%c0_27, %c0_28], %71 {strides = array<i32>} : memref<32x4xf32, #tpu.memory_space<vmem>>, vector<32x4xf32>,
    return
  }
}

</mosaic_0001>

<bundles_post_ra>
// kernel: multihead_forward.1
= control target key start
LH: loop header
LB: loop body
LE: loop exit
PB: predicated region body
PF: predicated region fallthrough
CT: control target
= control target key end

     0   :  { %v7115_v3 = vmov 0.0   ;;  %vm47_vm0 = vcmask 130048   ;;  %v39_v14 = vlaneseq  ;;  %s5544_s29 = smov 64   ;;  %vm253_vm1 = vcmask 523264   ;;  %s5545_s9 = smov 104   ;;  %s7106_s2 = inlined_call_operand.vmem [shape: f32[16,192], index: 2, kind: input, shape index: {}]   ;;  %s7107_s0 = inlined_call_operand.vmem [shape: f32[32,16], index: 0, kind: input, shape index: {}]   ;;  %s7108_s3 = inlined_call_operand.vmem [shape: f32[64,192], index: 3, kind: input, shape index: {}]   ;;  %s7109_s7 = inlined_call_operand.vmem [shape: f32[5,256], index: 7, kind: input, shape index: {}]   ;;  %s7110_s1 = inlined_call_operand.vmem [shape: f32[32,32], index: 1, kind: input, shape index: {}]   ;;  %s7111_s4 = inlined_call_operand.vmem [shape: f32[64,256], index: 4, kind: input, shape index: {}]   ;;  %s7112_s5 = inlined_call_operand.vmem [shape: f32[256,64], index: 5, kind: input, shape index: {}]   ;;  %s7113_s6 = inlined_call_operand.vmem [shape: f32[64,4], index: 6, kind: input, shape index: {}]   ;;  %s7114_s8 = inlined_call_operand.vmem [shape: f32[32,4], index: 8, kind: output, shape index: {}]  }
   0x1   :  { %v36_v0 = vld [vmem:[%s7106_s2 + $0x8] sm:$0xff]  ;;  %v38_v1 = vld [vmem:[%s7106_s2 + $0x18] sm:$0xff]  ;;  %v35_v2 = vld [vmem:[%s7106_s2] sm:$0xff]  ;;  %124 = vmatprep.mubr.f32.mxu1 %v7115_v3  ;;  %vm859_vm2 = vcmask 64512   ;;  %s5546_s10 = smov 120   ;;  %s5547_s11 = smov 88  }
   0x2   :  { %v5195_v4 = vpack.c.bf16 %v38_v1, %v36_v0  ;;  %v37_v5 = vld [vmem:[%s7106_s2 + $0x10] sm:$0xff]  ;;  %v29_v7 = vld [vmem:[%s7107_s0] sm:$0xff]  ;;  %v30_v8 = vld [vmem:[%s7107_s0 + $0x8] sm:$0xff]  ;;  %v5647_v15 = vshrl.u32 %v39_v14, 7  ;;  %s5548_s12 = smov 112   ;;  %s5549_s13 = smov 72  }
   0x3   :  { %v5197_v6 = vpack.c.bf16 %v37_v5, %v35_v2  ;;  %v31_v9 = vld [vmem:[%s7107_s0 + $0x10] sm:$0xff]  ;;  %v32_v10 = vld [vmem:[%s7107_s0 + $0x18] sm:$0xff]  ;;  %v230_v11 = vld [vmem:[%s7108_s3 + $0x8] sm:$0xff]  ;;  %s5550_s14 = smov 96   ;;  %s5551_s15 = smov 80   ;;  %vm1604_vm3 = vcmask 261120  }
   0x4   :  { %5196 = vmatprep.subr.bf16.mxu1 %v5195_v4  ;;  %v232_v12 = vld [vmem:[%s7108_s3 + $0x18] sm:$0xff]  ;;  %7123 = vst [vmem:[#allocation2_spill] sm:$0xff] %v5647_v15  ;;  %v41_v16 = vsub.s32 0, %v5647_v15  ;;  %v5653_v17 = vld [vmem:[%s7109_s7] sm:$0x1f]  ;;  %v231_v20 = vld [vmem:[%s7108_s3 + $0x10] sm:$0xff] }
   0x5   :  { %5198 = vmatpush1.bf16.msra.mxu1 %v5197_v6  ;;  %v5199_v13 = vpack.c.bf16 %v232_v12, %v230_v11  ;;  %v229_v19 = vld [vmem:[%s7108_s3] sm:$0xff]  ;;  %v234_v25 = vld [vmem:[%s7108_s3 + $0x28] sm:$0xff]  ;;  %v236_v26 = vld [vmem:[%s7108_s3 + $0x38] sm:$0xff]  ;;  %vm5553_vm4 = vmmov 0   ;;  %s5557_s23 = smov 24   ;;  %s5558_s0 = smov 8  }
   0x6   :  { %v42_v18 = vrot.slane %v5653_v17, %v41_v16  ;;  %v5201_v21 = vpack.c.bf16 %v231_v20, %v229_v19  ;;  %v5203_v27 = vpack.c.bf16 %v236_v26, %v234_v25  ;;  %v233_v28 = vld [vmem:[%s7108_s3 + $0x20] sm:$0xff]  ;;  %v235_v29 = vld [vmem:[%s7108_s3 + $0x30] sm:$0xff]  ;;  %v238_v34 = vld [vmem:[%s7108_s3 + $0x48] sm:$0xff]  ;;  %s5560_s17 = smov 40   ;;  %s5561_s28 = smov 48   ;;  %vm4357_vm6 = vcmask 195584  }
   0x7   :  { %5200 = vmatprep.subr.bf16.mxu1 %v5199_v13  ;;  %v5205_v30 = vpack.c.bf16 %v235_v29, %v233_v28  ;;  %v240_v35 = vld [vmem:[%s7108_s3 + $0x58] sm:$0xff]  ;;  %v237_v37 = vld [vmem:[%s7108_s3 + $0x40] sm:$0xff]  ;;  %v239_v38 = vld [vmem:[%s7108_s3 + $0x50] sm:$0xff]  ;;  %vm4366_vm7 = vcmask 326656   ;;  %vm4371_vm8 = vcmask 392192   ;;  %vm4376_vm9 = vcmask 457728  }
   0x8   :  { %4757 = vmatmul.mubr.msk.f32.vlgmr.msra.gmra.mrb[0].mxu1 %vm47_vm0, %v29_v7  ;;  %v5207_v36 = vpack.c.bf16 %v240_v35, %v238_v34  ;;  %v5209_v39 = vpack.c.bf16 %v239_v38, %v237_v37  ;;  %v242_v43 = vld [vmem:[%s7108_s3 + $0x68] sm:$0xff]  ;;  %v244_v44 = vld [vmem:[%s7108_s3 + $0x78] sm:$0xff]  ;;  %v241_v46 = vld [vmem:[%s7108_s3 + $0x60] sm:$0xff]  ;;  %vm4748_vm10 = vcmask 31744  }
   0x9   :  { %130 = vmatprep.mubr.f32.mxu1 %v7115_v3  ;;  %5202 = vmatpush1.bf16.msra.mxu1 %v5201_v21  ;;  %v5211_v45 = vpack.c.bf16 %v244_v44, %v242_v43  ;;  %v243_v47 = vld [vmem:[%s7108_s3 + $0x70] sm:$0xff]  ;;  %v5705_v57 = vld [vmem:[%s7109_s7 + $0x8] sm:$0x1f]  ;;  %vm6477_vm5 = vmpackc.low %vm1604_vm3, %vm1604_vm3 }
   0xa   :  { %5204 = vmatprep.subr.bf16.mxu1 %v5203_v27  ;;  %v5213_v48 = vpack.c.bf16 %v243_v47, %v241_v46  ;;  %v46_v58 = vrot.slane %v5705_v57, %v41_v16 }
   0xc   :  { %4758 = vmatmul.mubr.msk.f32.gmra.mrb[2].mxu1 %vm47_vm0, %v30_v8 }
   0xd   :  { %136 = vmatprep.mubr.f32.mxu1 %v7115_v3  ;;  %5206 = vmatpush1.bf16.msra.mxu1 %v5205_v30 }
   0xe   :  { %5208 = vmatprep.subr.bf16.mxu1 %v5207_v36 }
  0x10   :  { %4759 = vmatmul.mubr.msk.f32.gmra.mrb[4].mxu1 %vm47_vm0, %v31_v9 }
  0x11   :  { %142 = vmatprep.mubr.f32.mxu1 %v7115_v3  ;;  %5210 = vmatpush1.bf16.msra.mxu1 %v5209_v39 }
  0x12   :  { %5212 = vmatprep.subr.bf16.mxu1 %v5211_v45 }
  0x14   :  { %4760 = vmatmul.mubr.msk.f32.gmra.mrb[6].mxu1 %vm47_vm0, %v32_v10 }
  0x15   :  { %330 = vmatprep.mubr.f32.mxu1 %v7115_v3  ;;  %5214 = vmatpush1.bf16.msra.mxu1 %v5213_v48 }
  0xdb   :  { %v126_v22 = vpop.f32.mrb[0].mxu1 }
  0xdc   :  { %v127_v23 = vadd.f32 %v126_v22, %v42_v18  ;;  %v128_v24 = vpop.f32.mrb[1].mxu1 }
  0xdd   :  { %v129_v60 = vadd.f32 %v128_v24, %v46_v58 }
  0xde   :  { %5365 = vtanh.f32 %v127_v23  ;;  %v4761_v56 = vmul.f32 -1.442695, %v127_v23 }
  0xdf   :  { %v132_v31 = vpop.f32.mrb[2].mxu1  ;;  %v4765_v62 = vmul.f32 -1.442695, %v129_v60 }
  0xe0   :  { %v133_v32 = vadd.f32 %v132_v31, %v42_v18  ;;  %v134_v33 = vpop.f32.mrb[3].mxu1 }
  0xe1   :  { %v135_v63 = vadd.f32 %v134_v33, %v46_v58 }
  0xe2   :  { %5367 = vtanh.f32 %v133_v32  ;;  %v4762_v59 = vmul.f32 -1.442695, %v133_v32 }
  0xe3   :  { %v138_v40 = vpop.f32.mrb[4].mxu1  ;;  %v4766_v2 = vmul.f32 -1.442695, %v135_v63 }
  0xe4   :  { %v139_v41 = vadd.f32 %v138_v40, %v42_v18  ;;  %v140_v42 = vpop.f32.mrb[5].mxu1 }
  0xe5   :  { %v141_v4 = vadd.f32 %v140_v42, %v46_v58 }
  0xe6   :  { %5369 = vtanh.f32 %v139_v41  ;;  %v4763_v61 = vmul.f32 -1.442695, %v139_v41 }
  0xe7   :  { %v144_v49 = vpop.f32.mrb[6].mxu1  ;;  %v4767_v7 = vmul.f32 -1.442695, %v141_v4 }
  0xe8   :  { %v5366_v50 = vpop.eup %5365  ;;  %v145_v51 = vadd.f32 %v144_v49, %v42_v18  ;;  %v146_v52 = vpop.f32.mrb[7].mxu1  ;;  %v247_v49 = vsub.s32 1, %v5647_v15 }
  0xe9   :  { %205 = vrot.lane.b32.xlu0 %v5366_v50, %s5544_s29  ;;  %v147_v8 = vadd.f32 %v146_v52, %v46_v58 }
  0xea   :  { %5371 = vtanh.f32 %v145_v51  ;;  %v4764_v0 = vmul.f32 -1.442695, %v145_v51  ;;  %v248_v50 = vrot.slane %v5653_v17, %v247_v49 }
  0xeb   :  { %5373 = vpow2.f32 %v4761_v56  ;;  %v4768_v11 = vmul.f32 -1.442695, %v147_v8  ;;  %v252_v56 = vrot.slane %v5705_v57, %v247_v49 }
  0xec   :  { %v5368_v53 = vpop.eup %5367  ;;  %5375 = vpow2.f32 %v4762_v59 }
  0xed   :  { %207 = vrot.lane.b32.xlu0 %v5368_v53, %s5544_s29  ;;  %5377 = vpow2.f32 %v4763_v61 }
  0xee   :  { %5379 = vpow2.f32 %v4765_v62 }
  0xef   :  { %5381 = vpow2.f32 %v4764_v0 }
  0xf0   :  { %v5370_v54 = vpop.eup %5369  ;;  %5383 = vpow2.f32 %v4766_v2 }
  0xf1   :  { %209 = vrot.lane.b32.xlu1 %v5370_v54, %s5544_s29 }
  0xf4   :  { %v5372_v55 = vpop.eup %5371 }
  0xf5   :  { %211 = vrot.lane.b32.xlu1 %v5372_v55, %s5544_s29  ;;  %v5374_v1 = vpop.eup %5373 }
  0xf6   :  { %v161_v5 = vadd.f32 1.0, %v5374_v1  ;;  %v5376_v6 = vpop.eup %5375 }
  0xf7   :  { %v162_v9 = vadd.f32 1.0, %v5376_v6  ;;  %v5378_v10 = vpop.eup %5377 }
  0xf8   :  { %5385 = vrcp.f32 %v161_v5  ;;  %v5380_v12 = vpop.eup %5379  ;;  %v163_v13 = vadd.f32 1.0, %v5378_v10 }
  0xf9   :  { %5387 = vpow2.f32 %v4767_v7  ;;  %v5382_v14 = vpop.eup %5381  ;;  %v189_v16 = vadd.f32 1.0, %v5380_v12 }
  0xfa   :  { %5389 = vrcp.f32 %v162_v9  ;;  %v164_v18 = vadd.f32 1.0, %v5382_v14  ;;  %v5384_v19 = vpop.eup %5383 }
  0xfb   :  { %5391 = vpow2.f32 %v4768_v11  ;;  %v190_v23 = vadd.f32 1.0, %v5384_v19 }
  0xfc   :  { %5393 = vrcp.f32 %v163_v13 }
  0xfd   :  { %5395 = vrcp.f32 %v189_v16 }
  0xfe   :  { %5397 = vrcp.f32 %v164_v18 }
 0x102   :  { %v5386_v20 = vpop.eup %5385 }
 0x103   :  { %v5388_v24 = vpop.eup %5387 }
 0x104   :  { %v5390_v25 = vpop.eup %5389  ;;  %v191_v28 = vadd.f32 1.0, %v5388_v24 }
 0x105   :  { %v5392_v29 = vpop.eup %5391 }
 0x106   :  { %v5394_v30 = vpop.eup %5393  ;;  %v192_v33 = vadd.f32 1.0, %v5392_v29 }
 0x107   :  { %v5396_v34 = vpop.eup %5395 }
 0x108   :  { %v5398_v35 = vpop.eup %5397 }
 0x15b   :  { %v206_v21 = vpop.permute.xlu0 %205 }
 0x15c   :  { %v217_v22 = vmul.f32 %v5386_v20, %v206_v21 }
 0x15e   :  { %5399 = vtanh.f32 %v217_v22 }
 0x15f   :  { %v208_v26 = vpop.permute.xlu0 %207  ;;  %5401 = vrcp.f32 %v190_v23 }
 0x160   :  { %v218_v27 = vmul.f32 %v5390_v25, %v208_v26 }
 0x162   :  { %5403 = vtanh.f32 %v218_v27 }
 0x163   :  { %v210_v31 = vpop.permute.xlu1 %209  ;;  %5405 = vrcp.f32 %v191_v28 }
 0x164   :  { %v219_v32 = vmul.f32 %v5394_v30, %v210_v31 }
 0x166   :  { %5407 = vtanh.f32 %v219_v32 }
 0x167   :  { %v212_v36 = vpop.permute.xlu1 %211  ;;  %5409 = vrcp.f32 %v192_v33 }
 0x168   :  { %v5400_v37 = vpop.eup %5399  ;;  %v220_v38 = vmul.f32 %v5398_v35, %v212_v36 }
 0x169   :  { %v225_v39 = vmul.f32 %v5400_v37, %v5396_v34  ;;  %v5402_v40 = vpop.eup %5401 }
 0x16a   :  { %5411 = vtanh.f32 %v220_v38 }
 0x16b   :  { %4769 = vmatmul.mubr.msk.f32.vlgmr.msra.gmra.mrb[8].mxu1 %vm253_vm1, %v225_v39 }
 0x16c   :  { %v5404_v41 = vpop.eup %5403  ;;  %336 = vmatprep.mubr.f32.mxu1 %v7115_v3 }
 0x16d   :  { %v226_v42 = vmul.f32 %v5404_v41, %v5402_v40  ;;  %v5406_v43 = vpop.eup %5405 }
 0x16f   :  { %4770 = vmatmul.mubr.msk.f32.gmra.mrb[10].mxu1 %vm253_vm1, %v226_v42 }
 0x170   :  { %v5408_v44 = vpop.eup %5407  ;;  %342 = vmatprep.mubr.f32.mxu1 %v7115_v3 }
 0x171   :  { %v227_v45 = vmul.f32 %v5408_v44, %v5406_v43  ;;  %v5410_v46 = vpop.eup %5409 }
 0x173   :  { %4771 = vmatmul.mubr.msk.f32.gmra.mrb[12].mxu1 %vm253_vm1, %v227_v45 }
 0x174   :  { %v5412_v47 = vpop.eup %5411  ;;  %348 = vmatprep.mubr.f32.mxu1 %v7115_v3 }
 0x175   :  { %v228_v48 = vmul.f32 %v5412_v47, %v5410_v46 }
 0x177   :  { %4772 = vmatmul.mubr.msk.f32.gmra.mrb[14].mxu1 %vm253_vm1, %v228_v48 }
 0x23e   :  { %v332_v51 = vpop.f32.mrb[8].mxu1 }
 0x23f   :  { %v333_v52 = vadd.f32 %v332_v51, %v248_v50  ;;  %v334_v53 = vpop.f32.mrb[9].mxu1 }
 0x240   :  { %v5725_v60 = vadd.f32 %v334_v53, %v252_v56 }
 0x241   :  { %375 = vrot.lane.b32.xlu1 %v333_v52, %s5545_s9  ;;  %359 = vrot.lane.b32.xlu0 %v333_v52, %s5546_s10 }
 0x242   :  { %5023 = vmatprep.mubr.msk.f32.mxu0 %vm859_vm2, %v333_v52  ;;  %v338_v54 = vpop.f32.mrb[10].mxu1 }
 0x243   :  { %v340_v55 = vpop.f32.mrb[11].mxu1  ;;  %v5735_v57 = vadd.f32 %v338_v54, %v248_v50 }
 0x244   :  { %v5749_v63 = vadd.f32 %v340_v55, %v252_v56 }
 0x245   :  { %391 = vrot.lane.b32.xlu1 %v333_v52, %s5547_s11  ;;  %367 = vrot.lane.b32.xlu0 %v333_v52, %s5548_s12 }
 0x246   :  { %v344_v17 = vpop.f32.mrb[12].mxu1 }
 0x247   :  { %v346_v58 = vpop.f32.mrb[13].mxu1  ;;  %v5763_v0 = vadd.f32 %v344_v17, %v248_v50 }
 0x248   :  { %v5773_v1 = vadd.f32 %v346_v58, %v252_v56 }
 0x249   :  { %407 = vrot.lane.b32.xlu1 %v333_v52, %s5549_s13  ;;  %383 = vrot.lane.b32.xlu0 %v333_v52, %s5550_s14 }
 0x24a   :  { %v350_v59 = vpop.f32.mrb[14].mxu1 }
 0x24b   :  { %v352_v61 = vpop.f32.mrb[15].mxu1  ;;  %v5779_v2 = vadd.f32 %v350_v59, %v248_v50 }
 0x24c   :  { %v5727_v62 = vadd.f32 %v352_v61, %v252_v56 }
 0x24d   :  { %419 = vrot.lane.b32.xlu1 %v5725_v60, %s5546_s10  ;;  %399 = vrot.lane.b32.xlu0 %v333_v52, %s5551_s15 }
 0x251   :  { %431 = vrot.lane.b32.xlu1 %v5725_v60, %s5548_s12  ;;  %507 = vrot.lane.b32.xlu0 %v333_v52, %s5544_s29 }
 0x255   :  { %361 = vrot.lane.b32.xlu1 %v5735_v57, %s5546_s10  ;;  %443 = vrot.lane.b32.xlu0 %v5725_v60, %s5545_s9 }
 0x259   :  { %369 = vrot.lane.b32.xlu1 %v5735_v57, %s5548_s12  ;;  %385 = vrot.lane.b32.xlu0 %v5735_v57, %s5550_s14 }
 0x25d   :  { %377 = vrot.lane.b32.xlu1 %v5735_v57, %s5545_s9  ;;  %401 = vrot.lane.b32.xlu0 %v5735_v57, %s5551_s15 }
 0x261   :  { %393 = vrot.lane.b32.xlu1 %v5735_v57, %s5547_s11  ;;  %421 = vrot.lane.b32.xlu0 %v5749_v63, %s5546_s10 }
 0x265   :  { %409 = vrot.lane.b32.xlu1 %v5735_v57, %s5549_s13  ;;  %433 = vrot.lane.b32.xlu0 %v5749_v63, %s5548_s12 }
 0x269   :  { %509 = vrot.lane.b32.xlu1 %v5735_v57, %s5544_s29  ;;  %445 = vrot.lane.b32.xlu0 %v5749_v63, %s5545_s9 }
 0x26d   :  { %395 = vrot.lane.b32.xlu1 %v5763_v0, %s5547_s11  ;;  %363 = vrot.lane.b32.xlu0 %v5763_v0, %s5546_s10 }
 0x271   :  { %403 = vrot.lane.b32.xlu1 %v5763_v0, %s5551_s15  ;;  %371 = vrot.lane.b32.xlu0 %v5763_v0, %s5548_s12 }
 0x275   :  { %423 = vrot.lane.b32.xlu1 %v5773_v1, %s5546_s10  ;;  %379 = vrot.lane.b32.xlu0 %v5763_v0, %s5545_s9 }
 0x279   :  { %365 = vrot.lane.b32.xlu1 %v5779_v2, %s5546_s10  ;;  %387 = vrot.lane.b32.xlu0 %v5763_v0, %s5550_s14 }
 0x27d   :  { %381 = vrot.lane.b32.xlu1 %v5779_v2, %s5545_s9  ;;  %411 = vrot.lane.b32.xlu0 %v5763_v0, %s5549_s13 }
 0x281   :  { %397 = vrot.lane.b32.xlu1 %v5779_v2, %s5547_s11  ;;  %511 = vrot.lane.b32.xlu0 %v5763_v0, %s5544_s29 }
 0x285   :  { %413 = vrot.lane.b32.xlu1 %v5779_v2, %s5549_s13  ;;  %373 = vrot.lane.b32.xlu0 %v5779_v2, %s5548_s12 }
 0x289   :  { %513 = vrot.lane.b32.xlu1 %v5779_v2, %s5544_s29  ;;  %389 = vrot.lane.b32.xlu0 %v5779_v2, %s5550_s14 }
 0x28d   :  { %405 = vrot.lane.b32.xlu0 %v5779_v2, %s5551_s15 }
 0x291   :  { %425 = vrot.lane.b32.xlu0 %v5727_v62, %s5546_s10 }
 0x2b3   :  { %v5805_v4 = vpop.permute.xlu1 %375  ;;  %v5807_v5 = vpop.permute.xlu0 %359 }
 0x2b4   :  { %531 = vrot.lane.b32.xlu1 %v5805_v4, %s5544_s29  ;;  %515 = vrot.lane.b32.xlu0 %v5807_v5, %s5544_s29 }
 0x2b7   :  { %v5813_v6 = vpop.permute.xlu1 %391  ;;  %v5815_v7 = vpop.permute.xlu0 %367 }
 0x2b8   :  { %547 = vrot.lane.b32.xlu1 %v5813_v6, %s5544_s29  ;;  %523 = vrot.lane.b32.xlu0 %v5815_v7, %s5544_s29 }
 0x2bb   :  { %v5821_v8 = vpop.permute.xlu1 %407  ;;  %v5823_v9 = vpop.permute.xlu0 %383 }
 0x2bc   :  { %563 = vrot.lane.b32.xlu1 %v5821_v8, %s5544_s29  ;;  %539 = vrot.lane.b32.xlu0 %v5823_v9, %s5544_s29 }
 0x2bf   :  { %v5829_v10 = vpop.permute.xlu1 %419  ;;  %v5831_v11 = vpop.permute.xlu0 %399 }
 0x2c0   :  { %555 = vrot.lane.b32.xlu0 %v5831_v11, %s5544_s29 }
 0x2c3   :  { %v5835_v12 = vpop.permute.xlu1 %431  ;;  %v508_v13 = vpop.permute.xlu0 %507 }
 0x2c7   :  { %v5837_v14 = vpop.permute.xlu1 %361  ;;  %v5839_v16 = vpop.permute.xlu0 %443 }
 0x2c8   :  { %517 = vrot.lane.b32.xlu1 %v5837_v14, %s5544_s29 }
 0x2cb   :  { %v5843_v18 = vpop.permute.xlu1 %369  ;;  %v5845_v19 = vpop.permute.xlu0 %385 }
 0x2cc   :  { %525 = vrot.lane.b32.xlu1 %v5843_v18, %s5544_s29  ;;  %541 = vrot.lane.b32.xlu0 %v5845_v19, %s5544_s29 }
 0x2cf   :  { %v5851_v20 = vpop.permute.xlu1 %377  ;;  %v5853_v21 = vpop.permute.xlu0 %401 }
 0x2d0   :  { %533 = vrot.lane.b32.xlu1 %v5851_v20, %s5544_s29  ;;  %557 = vrot.lane.b32.xlu0 %v5853_v21, %s5544_s29 }
 0x2d3   :  { %v5859_v22 = vpop.permute.xlu1 %393  ;;  %v5861_v23 = vpop.permute.xlu0 %421 }
 0x2d4   :  { %549 = vrot.lane.b32.xlu1 %v5859_v22, %s5544_s29 }
 0x2d7   :  { %v5865_v24 = vpop.permute.xlu1 %409  ;;  %v5867_v25 = vpop.permute.xlu0 %433 }
 0x2d8   :  { %565 = vrot.lane.b32.xlu1 %v5865_v24, %s5544_s29 }
 0x2db   :  { %v510_v26 = vpop.permute.xlu1 %509  ;;  %v5871_v27 = vpop.permute.xlu0 %445 }
 0x2df   :  { %v5873_v28 = vpop.permute.xlu1 %395  ;;  %v5875_v29 = vpop.permute.xlu0 %363 }
 0x2e0   :  { %551 = vrot.lane.b32.xlu1 %v5873_v28, %s5544_s29  ;;  %519 = vrot.lane.b32.xlu0 %v5875_v29, %s5544_s29 }
 0x2e3   :  { %v5881_v30 = vpop.permute.xlu1 %403  ;;  %v372_v31 = vpop.permute.xlu0 %371 }
 0x2e4   :  { %5042 = vmatprep.mubr.msk.f32.mxu1 %vm859_vm2, %v372_v31  ;;  %527 = vrot.lane.b32.xlu0 %v372_v31, %s5544_s29 }
 0x2e7   :  { %v5885_v32 = vpop.permute.xlu1 %423  ;;  %v5887_v33 = vpop.permute.xlu0 %379 }
 0x2e8   :  { %535 = vrot.lane.b32.xlu0 %v5887_v33, %s5544_s29 }
 0x2eb   :  { %v5891_v34 = vpop.permute.xlu0 %387  ;;  %v5895_v35 = vpop.permute.xlu1 %365 }
 0x2ec   :  { %543 = vrot.lane.b32.xlu0 %v5891_v34, %s5544_s29 }
 0x2ef   :  { %v5897_v36 = vpop.permute.xlu0 %411  ;;  %v5903_v37 = vpop.permute.xlu1 %381 }
 0x2f0   :  { %559 = vrot.lane.b32.xlu0 %v5881_v30, %s5544_s29  ;;  %567 = vrot.lane.b32.xlu1 %v5897_v36, %s5544_s29 }
 0x2f3   :  { %v512_v38 = vpop.permute.xlu0 %511  ;;  %v5913_v40 = vpop.permute.xlu1 %397 }
 0x2f4   :  { %521 = vrot.lane.b32.xlu1 %v5895_v35, %s5544_s29 }
 0x2f7   :  { %v5907_v39 = vpop.permute.xlu0 %373  ;;  %v5921_v42 = vpop.permute.xlu1 %413 }
 0x2f8   :  { %537 = vrot.lane.b32.xlu1 %v5903_v37, %s5544_s29  ;;  %529 = vrot.lane.b32.xlu0 %v5907_v39, %s5544_s29 }
 0x2fb   :  { %v5915_v41 = vpop.permute.xlu0 %389  ;;  %v514_v45 = vpop.permute.xlu1 %513 }
 0x2fc   :  { %553 = vrot.lane.b32.xlu1 %v5913_v40, %s5544_s29  ;;  %545 = vrot.lane.b32.xlu0 %v5915_v41, %s5544_s29 }
 0x2ff   :  { %v5923_v43 = vpop.permute.xlu0 %405 }
 0x300   :  { %569 = vrot.lane.b32.xlu1 %v5921_v42, %s5544_s29  ;;  %561 = vrot.lane.b32.xlu0 %v5923_v43, %s5544_s29 }
 0x303   :  { %v5933_v44 = vpop.permute.xlu0 %425 }
 0x304   :  { %447 = vrot.lane.b32.xlu1 %v5773_v1, %s5545_s9 }
 0x308   :  { %437 = vrot.lane.b32.xlu1 %v5727_v62, %s5548_s12 }
 0x31e   :  { %603 = vxpose.xlu0.b32.start [1/4] (short) (narrow) %v508_v13, 8 }
 0x322   :  { %604 = vxpose.xlu0.b32.cont [2/4] (short) (narrow) %v510_v26, 8 }
 0x326   :  { %605 = vxpose.xlu0.b32.cont [3/4] (short) (narrow) %v512_v38, 8  ;;  %v516_v46 = vpop.permute.xlu0 %515  ;;  %v532_v47 = vpop.permute.xlu1 %531 }
 0x32a   :  { %606 = vxpose.xlu0.b32.end [4/4] (short) (narrow) %v514_v45, 8  ;;  %v524_v48 = vpop.permute.xlu0 %523  ;;  %v548_v49 = vpop.permute.xlu1 %547 }
 0x32e   :  { %667 = vxpose.xlu0.b32.start [1/4] (short) (narrow) %v524_v48, 8  ;;  %v564_v50 = vpop.permute.xlu1 %563  ;;  %v540_v52 = vpop.permute.xlu0 %539 }
 0x331   :  { %635 = vxpose.xlu1.b32.start [1/4] (short) (narrow) %v516_v46, 8 }
 0x332   :  { %v556_v54 = vpop.permute.xlu0 %555 }
 0x33a   :  { %v518_v51 = vpop.permute.xlu1 %517 }
 0x33b   :  { %636 = vxpose.xlu1.b32.cont [2/4] (short) (narrow) %v518_v51, 8 }
 0x33e   :  { %v526_v53 = vpop.permute.xlu1 %525  ;;  %v542_v55 = vpop.permute.xlu0 %541 }
 0x33f   :  { %668 = vxpose.xlu0.b32.cont [2/4] (short) (narrow) %v526_v53, 8 }
 0x342   :  { %v534_v17 = vpop.permute.xlu1 %533  ;;  %v558_v56 = vpop.permute.xlu0 %557 }
 0x346   :  { %v550_v59 = vpop.permute.xlu1 %549 }
 0x34a   :  { %v566_v13 = vpop.permute.xlu1 %565 }
 0x352   :  { %v520_v58 = vpop.permute.xlu0 %519  ;;  %v552_v31 = vpop.permute.xlu1 %551 }
 0x353   :  { %637 = vxpose.xlu1.b32.cont [3/4] (short) (narrow) %v520_v58, 8 }
 0x356   :  { %v528_v61 = vpop.permute.xlu0 %527 }
 0x357   :  { %669 = vxpose.xlu0.b32.cont [3/4] (short) (narrow) %v528_v61, 8 }
 0x35a   :  { %v536_v26 = vpop.permute.xlu0 %535 }
 0x35e   :  { %v544_v38 = vpop.permute.xlu0 %543 }
 0x362   :  { %v568_v45 = vpop.permute.xlu1 %567  ;;  %v560_v46 = vpop.permute.xlu0 %559 }
 0x366   :  { %v522_v48 = vpop.permute.xlu1 %521 }
 0x367   :  { %638 = vxpose.xlu1.b32.end [4/4] (short) (narrow) %v522_v48, 8 }
 0x36a   :  { %v530_v51 = vpop.permute.xlu0 %529  ;;  %v538_v53 = vpop.permute.xlu1 %537 }
 0x36b   :  { %699 = vxpose.xlu1.b32.start [1/4] (short) (narrow) %v532_v47, 8  ;;  %670 = vxpose.xlu0.b32.end [4/4] (short) (narrow) %v530_v51, 8 }
 0x36e   :  { %v546_v58 = vpop.permute.xlu0 %545  ;;  %v554_v61 = vpop.permute.xlu1 %553 }
 0x36f   :  { %700 = vxpose.xlu1.b32.cont [2/4] (short) (narrow) %v534_v17, 8  ;;  %731 = vxpose.xlu0.b32.start [1/4] (short) (narrow) %v540_v52, 8 }
 0x372   :  { %v562_v48 = vpop.permute.xlu0 %561 }
 0x373   :  { %701 = vxpose.xlu1.b32.cont [3/4] (short) (narrow) %v536_v26, 8  ;;  %732 = vxpose.xlu0.b32.cont [2/4] (short) (narrow) %v542_v55, 8 }
 0x377   :  { %702 = vxpose.xlu1.b32.end [4/4] (short) (narrow) %v538_v53, 8  ;;  %733 = vxpose.xlu0.b32.cont [3/4] (short) (narrow) %v544_v38, 8 }
 0x37b   :  { %763 = vxpose.xlu1.b32.start [1/4] (short) (narrow) %v548_v49, 8  ;;  %734 = vxpose.xlu0.b32.end [4/4] (short) (narrow) %v546_v58, 8  ;;  %v570_v49 = vpop.permute.xlu1 %569 }
 0x37f   :  { %764 = vxpose.xlu1.b32.cont [2/4] (short) (narrow) %v550_v59, 8  ;;  %795 = vxpose.xlu0.b32.start [1/4] (short) (narrow) %v556_v54, 8 }
 0x383   :  { %765 = vxpose.xlu1.b32.cont [3/4] (short) (narrow) %v552_v31, 8  ;;  %796 = vxpose.xlu0.b32.cont [2/4] (short) (narrow) %v558_v56, 8 }
 0x387   :  { %766 = vxpose.xlu1.b32.end [4/4] (short) (narrow) %v554_v61, 8  ;;  %797 = vxpose.xlu0.b32.cont [3/4] (short) (narrow) %v560_v46, 8 }
 0x38b   :  { %1957 = vxpose.xlu1.b32.start [1/4] (short) (narrow) %v5725_v60, 8  ;;  %798 = vxpose.xlu0.b32.end [4/4] (short) (narrow) %v562_v48, 8 }
 0x38f   :  { %1958 = vxpose.xlu1.b32.cont [2/4] (short) (narrow) %v5749_v63, 8 }
 0x393   :  { %1959 = vxpose.xlu1.b32.cont [3/4] (short) (narrow) %v5773_v1, 8 }
 0x397   :  { %1960 = vxpose.xlu1.b32.end [4/4] (short) (narrow) %v5727_v62, 8 }
 0x39b   :  { %827 = vxpose.xlu1.b32.start [1/4] (short) (narrow) %v564_v50, 8  ;;  %v5949_v50 = vpop.permute.xlu1 %447 }
 0x39e   :  { %v619_v47 = vpop.trf.xlu0 }
 0x39f   :  { %828 = vxpose.xlu1.b32.cont [2/4] (short) (narrow) %v566_v13, 8  ;;  %5021 = vmatprep.subr.mxu0 %v619_v47 }
 0x3a0   :  { %5022 = vmatpush3.msra.mxu0 %v619_v47 }
 0x3a1   :  { %5024 = vmatmul.mubr.msk.f32.vlgmr.msra.gmra.mrb[0].mxu0 %vm859_vm2, %v5735_v57  ;;  %v438_v57 = vpop.permute.xlu1 %437 }
 0x3a2   :  { %5026 = vmatprep.mubr.msk.f32.mxu0 %vm859_vm2, %v5763_v0 }
 0x3a3   :  { %829 = vxpose.xlu1.b32.cont [3/4] (short) (narrow) %v568_v45, 8 }
 0x3a5   :  { %5027 = vmatmul.mubr.msk.f32.gmra.mrb[2].mxu0 %vm859_vm2, %v5779_v2 }
 0x3a6   :  { %5031 = vmatprep.mubr.msk.f32.mxu0 %vm859_vm2, %v5807_v5 }
 0x3a7   :  { %830 = vxpose.xlu1.b32.end [4/4] (short) (narrow) %v570_v49, 8 }
 0x3b4   :  { %435 = vrot.lane.b32.xlu0 %v5773_v1, %s5548_s12 }
 0x3d2   :  { %1989 = vxpose.xlu0.b32.start [1/4] (short) (narrow) %v5829_v10, 8 }
 0x3d6   :  { %1990 = vxpose.xlu0.b32.cont [2/4] (short) (narrow) %v5861_v23, 8 }
 0x3da   :  { %1991 = vxpose.xlu0.b32.cont [3/4] (short) (narrow) %v5885_v32, 8 }
 0x3db   :  { %v651_v0 = vpop.trf.xlu1 }
 0x3dc   :  { %5029 = vmatprep.subr.mxu0 %v651_v0 }
 0x3dd   :  { %5030 = vmatpush3.msra.mxu0 %v651_v0 }
 0x3de   :  { %1992 = vxpose.xlu0.b32.end [4/4] (short) (narrow) %v5933_v44, 8  ;;  %5032 = vmatmul.mubr.msk.f32.vlgmr.msra.gmra.mrb[4].mxu0 %vm859_vm2, %v5837_v14 }
 0x3df   :  { %v683_v2 = vpop.trf.xlu0  ;;  %5034 = vmatprep.mubr.msk.f32.mxu0 %vm859_vm2, %v5875_v29  ;;  %v6054_v29 = vld [vmem:[%s7110_s1 + $0x18] sm:$0xff] }
 0x3e0   :  { %5343 = vmatprep.subr.mxu1 %v683_v2  ;;  %5037 = vmatprep.subr.mxu0 %v683_v2 }
 0x3e1   :  { %5344 = vmatpush3.msra.mxu1 %v683_v2  ;;  %5038 = vmatpush3.msra.mxu0 %v683_v2 }
 0x3e2   :  { %2021 = vxpose.xlu0.b32.start [1/4] (short) (narrow) %v5835_v12, 8  ;;  %5035 = vmatmul.mubr.msk.f32.gmra.mrb[6].mxu0 %vm859_vm2, %v5895_v35 }
 0x3e3   :  { %5043 = vmatmul.mubr.msk.f32.vlgmr.msra.gmra.mrb[16].mxu1 %vm859_vm2, %v5907_v39  ;;  %5039 = vmatprep.mubr.msk.f32.mxu0 %vm859_vm2, %v5815_v7 }
 0x3e4   :  { %5055 = vmatprep.mubr.msk.f32.mxu1 %vm859_vm2, %v5823_v9 }
 0x3e6   :  { %2022 = vxpose.xlu0.b32.cont [2/4] (short) (narrow) %v5867_v25, 8  ;;  %5040 = vmatmul.mubr.msk.f32.vlgmr.msra.gmra.mrb[8].mxu0 %vm859_vm2, %v5843_v18  ;;  %v6046_v25 = vld [vmem:[%s7110_s1] sm:$0xff] }
 0x3e7   :  { %5047 = vmatprep.mubr.msk.f32.mxu0 %vm859_vm2, %v5805_v4 }
 0x3eb   :  { %v715_v5 = vpop.trf.xlu1 }
 0x3ec   :  { %5045 = vmatprep.subr.mxu0 %v715_v5 }
 0x3ed   :  { %5046 = vmatpush3.msra.mxu0 %v715_v5 }
 0x3ee   :  { %5048 = vmatmul.mubr.msk.f32.vlgmr.msra.gmra.mrb[10].mxu0 %vm859_vm2, %v5851_v20  ;;  %v6036_v20 = vld [vmem:[%s7110_s1 + $0x10] sm:$0xff] }
 0x3ef   :  { %v747_v10 = vpop.trf.xlu0  ;;  %5050 = vmatprep.mubr.msk.f32.mxu0 %vm859_vm2, %v5887_v33 }
 0x3f0   :  { %5053 = vmatprep.subr.mxu1 %v747_v10 }
 0x3f1   :  { %5054 = vmatpush3.msra.mxu1 %v747_v10 }
 0x3f2   :  { %5051 = vmatmul.mubr.msk.f32.gmra.mrb[12].mxu0 %vm859_vm2, %v5903_v37  ;;  %5056 = vmatmul.mubr.msk.f32.vlgmr.msra.gmra.mrb[18].mxu1 %vm859_vm2, %v5845_v19 }
 0x3f3   :  { %5058 = vmatprep.mubr.msk.f32.mxu1 %vm859_vm2, %v5891_v34  ;;  %5063 = vmatprep.mubr.msk.f32.mxu0 %vm859_vm2, %v5813_v6 }
 0x3f6   :  { %5059 = vmatmul.mubr.msk.f32.gmra.mrb[20].mxu1 %vm859_vm2, %v5915_v41 }
 0x3f7   :  { %5071 = vmatprep.mubr.msk.f32.mxu1 %vm859_vm2, %v5831_v11 }
 0x3fb   :  { %v779_v4 = vpop.trf.xlu1 }
 0x3fc   :  { %5061 = vmatprep.subr.mxu0 %v779_v4 }
 0x3fd   :  { %5062 = vmatpush3.msra.mxu0 %v779_v4 }
 0x3fe   :  { %5064 = vmatmul.mubr.msk.f32.vlgmr.msra.gmra.mrb[14].mxu0 %vm859_vm2, %v5859_v22 }
 0x3ff   :  { %v811_v7 = vpop.trf.xlu0  ;;  %5066 = vmatprep.mubr.msk.f32.mxu0 %vm859_vm2, %v5873_v28 }
 0x400   :  { %5069 = vmatprep.subr.mxu1 %v811_v7 }
 0x401   :  { %5070 = vmatpush3.msra.mxu1 %v811_v7 }
 0x402   :  { %5067 = vmatmul.mubr.msk.f32.gmra.mrb[16].mxu0 %vm859_vm2, %v5913_v40  ;;  %5072 = vmatmul.mubr.msk.f32.vlgmr.msra.gmra.mrb[22].mxu1 %vm859_vm2, %v5853_v21 }
 0x403   :  { %5074 = vmatprep.mubr.msk.f32.mxu1 %vm859_vm2, %v5881_v30  ;;  %5079 = vmatprep.mubr.msk.f32.mxu0 %vm859_vm2, %v5821_v8  ;;  %v6026_v8 = vld [vmem:[%s7110_s1 + $0x8] sm:$0xff]  ;;  %s5556_s1 = smov 16  }
 0x406   :  { %5075 = vmatmul.mubr.msk.f32.gmra.mrb[24].mxu1 %vm859_vm2, %v5923_v43 }
 0x40b   :  { %v6003_v6 = vpop.trf.xlu1 }
 0x41b   :  { %v843_v9 = vpop.trf.xlu1 }
 0x41c   :  { %5077 = vmatprep.subr.mxu0 %v843_v9 }
 0x41d   :  { %5078 = vmatpush3.msra.mxu0 %v843_v9 }
 0x41e   :  { %5080 = vmatmul.mubr.msk.f32.vlgmr.msra.gmra.mrb[18].mxu0 %vm859_vm2, %v5865_v24 }
 0x41f   :  { %5082 = vmatprep.mubr.msk.f32.mxu0 %vm859_vm2, %v5897_v36 }
 0x422   :  { %5083 = vmatmul.mubr.msk.f32.gmra.mrb[20].mxu0 %vm859_vm2, %v5921_v42 }
 0x426   :  { %v436_v11 = vpop.permute.xlu0 %435 }
 0x427   :  { %2023 = vxpose.xlu0.b32.cont [3/4] (short) (narrow) %v436_v11, 8 }
 0x42b   :  { %2024 = vxpose.xlu0.b32.end [4/4] (short) (narrow) %v438_v57, 8 }
 0x454   :  { %449 = vrot.lane.b32.xlu0 %v5727_v62, %s5545_s9  ;;  %s5559_s9 = smov 32  }
 0x458   :  { %467 = vrot.lane.b32.xlu0 %v5725_v60, %s5547_s11 }
 0x45c   :  { %459 = vrot.lane.b32.xlu0 %v5773_v1, %s5550_s14 }
 0x460   :  { %473 = vrot.lane.b32.xlu0 %v5727_v62, %s5547_s11 }
 0x464   :  { %491 = vrot.lane.b32.xlu0 %v5725_v60, %s5549_s13 }
 0x468   :  { %483 = vrot.lane.b32.xlu0 %v5773_v1, %s5551_s15 }
 0x474   :  { %v5025_v12 = vpop.f32.mrb[0].mxu0 }
 0x475   :  { %v6029_v14 = vadd.f32 %v5025_v12, %v6026_v8  ;;  %v934_v18 = vpop.f32.mrb[1].mxu0 }
 0x476   :  { %v6049_v28 = vadd.f32 %v934_v18, %v6046_v25 }
 0x477   :  { %v1608_v19 = vsel %vm1604_vm3, %v6029_v14, -inf }
 0x478   :  { %1609 = vmax.xlane.f32.xlu1 %v1608_v19  ;;  %v5028_v21 = vpop.f32.mrb[2].mxu0  ;;  %v1605_v32 = vsel %vm1604_vm3, %v6049_v28, -inf }
 0x479   :  { %v944_v22 = vpop.f32.mrb[3].mxu0  ;;  %v6057_v30 = vadd.f32 %v5028_v21, %v6054_v29 }
 0x47a   :  { %v6039_v23 = vadd.f32 %v944_v22, %v6036_v20 }
 0x47b   :  { %v1614_v33 = vsel %vm1604_vm3, %v6057_v30, -inf }
 0x47c   :  { %v1611_v24 = vsel %vm1604_vm3, %v6039_v23, -inf }
 0x47d   :  { %1612 = vmax.xlane.f32.xlu1 %v1611_v24 }
 0x487   :  { %1606 = vmax.xlane.f32.xlu0 %v1605_v32 }
 0x48b   :  { %1615 = vmax.xlane.f32.xlu0 %v1614_v33 }
 0x4b1   :  { %v5033_v34 = vpop.f32.mrb[4].mxu0 }
 0x4b2   :  { %v6064_v35 = vadd.f32 %v5033_v34, %v6026_v8  ;;  %v1027_v36 = vpop.f32.mrb[5].mxu0 }
 0x4b3   :  { %v6075_v52 = vadd.f32 %v1027_v36, %v6046_v25 }
 0x4b4   :  { %v1620_v37 = vsel %vm1604_vm3, %v6064_v35, -inf }
 0x4b5   :  { %v5036_v39 = vpop.f32.mrb[6].mxu0  ;;  %1621 = vmax.xlane.f32.xlu0 %v1620_v37  ;;  %v1617_v26 = vsel %vm1604_vm3, %v6075_v52, -inf }
 0x4b6   :  { %v5044_v40 = vpop.f32.mrb[16].mxu1  ;;  %v1037_v41 = vpop.f32.mrb[7].mxu0  ;;  %v6085_v13 = vadd.f32 %v5036_v39, %v6054_v29 }
 0x4b7   :  { %v6069_v42 = vadd.f32 %v5044_v40, %v6054_v29  ;;  %v1130_v43 = vpop.f32.mrb[17].mxu1  ;;  %v6080_v17 = vadd.f32 %v1037_v41, %v6036_v20 }
 0x4b8   :  { %v6072_v44 = vadd.f32 %v1130_v43, %v6036_v20  ;;  %v1626_v45 = vsel %vm1604_vm3, %v6085_v13, -inf }
 0x4b9   :  { %v5041_v54 = vpop.f32.mrb[8].mxu0  ;;  %v1638_v55 = vsel %vm1604_vm3, %v6069_v42, -inf  ;;  %v1623_v31 = vsel %vm1604_vm3, %v6080_v17, -inf }
 0x4ba   :  { %1639 = vmax.xlane.f32.xlu0 %v1638_v55  ;;  %v1120_v56 = vpop.f32.mrb[9].mxu0  ;;  %v1635_v59 = vsel %vm1604_vm3, %v6072_v44, -inf  ;;  %v6100_v49 = vadd.f32 %v5041_v54, %v6026_v8 }
 0x4bb   :  { %1636 = vmax.xlane.f32.xlu1 %v1635_v59  ;;  %v6105_v0 = vadd.f32 %v1120_v56, %v6046_v25 }
 0x4bc   :  { %v1632_v7 = vsel %vm1604_vm3, %v6100_v49, -inf }
 0x4bd   :  { %v1629_v11 = vsel %vm1604_vm3, %v6105_v0, -inf }
 0x4be   :  { %1618 = vmax.xlane.f32.xlu0 %v1617_v26 }
 0x4bf   :  { %1624 = vmax.xlane.f32.xlu1 %v1623_v31 }
 0x4c1   :  { %v5049_v38 = vpop.f32.mrb[10].mxu0 }
 0x4c2   :  { %1627 = vmax.xlane.f32.xlu0 %v1626_v45  ;;  %v1213_v46 = vpop.f32.mrb[11].mxu0  ;;  %v6120_v12 = vadd.f32 %v5049_v38, %v6026_v8 }
 0x4c3   :  { %v6125_v19 = vadd.f32 %v1213_v46, %v6046_v25 }
 0x4c4   :  { %v1644_v32 = vsel %vm1604_vm3, %v6120_v12, -inf }
 0x4c5   :  { %v5052_v51 = vpop.f32.mrb[12].mxu0  ;;  %v5057_v53 = vpop.f32.mrb[18].mxu1  ;;  %v1641_v36 = vsel %vm1604_vm3, %v6125_v19, -inf }
 0x4c6   :  { %v6094_v58 = vadd.f32 %v5057_v53, %v6026_v8  ;;  %v1306_v61 = vpop.f32.mrb[19].mxu1  ;;  %v1223_v47 = vpop.f32.mrb[13].mxu0  ;;  %v6140_v43 = vadd.f32 %v5052_v51, %v6054_v29 }
 0x4c7   :  { %v6097_v48 = vadd.f32 %v1306_v61, %v6046_v25  ;;  %v6145_v55 = vadd.f32 %v1223_v47, %v6036_v20 }
 0x4c8   :  { %v1656_v57 = vsel %vm1604_vm3, %v6094_v58, -inf  ;;  %v1650_v38 = vsel %vm1604_vm3, %v6140_v43, -inf }
 0x4c9   :  { %v5060_v2 = vpop.f32.mrb[20].mxu1  ;;  %1657 = vmax.xlane.f32.xlu0 %v1656_v57  ;;  %v1653_v5 = vsel %vm1604_vm3, %v6097_v48, -inf  ;;  %v1647_v46 = vsel %vm1604_vm3, %v6145_v55, -inf }
 0x4ca   :  { %v1316_v10 = vpop.f32.mrb[21].mxu1  ;;  %1654 = vmax.xlane.f32.xlu1 %v1653_v5  ;;  %v6110_v4 = vadd.f32 %v5060_v2, %v6054_v29 }
 0x4cb   :  { %v6115_v9 = vadd.f32 %v1316_v10, %v6036_v20 }
 0x4cc   :  { %v1662_v18 = vsel %vm1604_vm3, %v6110_v4, -inf }
 0x4cd   :  { %1633 = vmax.xlane.f32.xlu0 %v1632_v7  ;;  %v1659_v22 = vsel %vm1604_vm3, %v6115_v9, -inf  ;;  %v6179_v7 = vpop.trf.xlu0 }
 0x4ce   :  { %1630 = vmax.xlane.f32.xlu1 %v1629_v11 }
 0x4d1   :  { %v5065_v21 = vpop.f32.mrb[14].mxu0  ;;  %1663 = vmax.xlane.f32.xlu0 %v1662_v18 }
 0x4d2   :  { %v1399_v24 = vpop.f32.mrb[15].mxu0  ;;  %1660 = vmax.xlane.f32.xlu1 %v1659_v22  ;;  %v6160_v51 = vadd.f32 %v5065_v21, %v6026_v8  ;;  %v6185_v21 = vpop.trf.xlu0 }
 0x4d3   :  { %v6165_v61 = vadd.f32 %v1399_v24, %v6046_v25 }
 0x4d4   :  { %v1668_v2 = vsel %vm1604_vm3, %v6160_v51, -inf }
 0x4d5   :  { %v5068_v33 = vpop.f32.mrb[16].mxu0  ;;  %v5073_v34 = vpop.f32.mrb[22].mxu1  ;;  %1645 = vmax.xlane.f32.xlu0 %v1644_v32  ;;  %v1665_v10 = vsel %vm1604_vm3, %v6165_v61, -inf }
 0x4d6   :  { %v6134_v37 = vadd.f32 %v5073_v34, %v6026_v8  ;;  %v1492_v39 = vpop.f32.mrb[23].mxu1  ;;  %1642 = vmax.xlane.f32.xlu1 %v1641_v36  ;;  %v1409_v41 = vpop.f32.mrb[17].mxu0  ;;  %v6170_v57 = vadd.f32 %v5068_v33, %v6054_v29 }
 0x4d7   :  { %v6137_v40 = vadd.f32 %v1492_v39, %v6046_v25  ;;  %v6175_v5 = vadd.f32 %v1409_v41, %v6036_v20  ;;  %v450_v24 = vpop.permute.xlu0 %449 }
 0x4d8   :  { %v1680_v54 = vsel %vm1604_vm3, %v6134_v37, -inf  ;;  %v1674_v11 = vsel %vm1604_vm3, %v6170_v57, -inf }
 0x4d9   :  { %v5076_v56 = vpop.f32.mrb[24].mxu1  ;;  %1681 = vmax.xlane.f32.xlu0 %v1680_v54  ;;  %v1677_v59 = vsel %vm1604_vm3, %v6137_v40, -inf  ;;  %v1671_v18 = vsel %vm1604_vm3, %v6175_v5, -inf }
 0x4da   :  { %v1502_v26 = vpop.f32.mrb[25].mxu1  ;;  %1678 = vmax.xlane.f32.xlu1 %v1677_v59  ;;  %v6150_v31 = vadd.f32 %v5076_v56, %v6054_v29 }
 0x4db   :  { %v6155_v45 = vadd.f32 %v1502_v26, %v6036_v20 }
 0x4dc   :  { %v1686_v53 = vsel %vm1604_vm3, %v6150_v31, -inf }
 0x4dd   :  { %1651 = vmax.xlane.f32.xlu0 %v1650_v38  ;;  %v1683_v47 = vsel %vm1604_vm3, %v6155_v45, -inf }
 0x4de   :  { %1648 = vmax.xlane.f32.xlu1 %v1647_v46 }
 0x4e1   :  { %1687 = vmax.xlane.f32.xlu0 %v1686_v53 }
 0x4e2   :  { %1684 = vmax.xlane.f32.xlu1 %v1683_v47 }
 0x4e5   :  { %1669 = vmax.xlane.f32.xlu0 %v1668_v2 }
 0x4e6   :  { %1666 = vmax.xlane.f32.xlu1 %v1665_v10 }
 0x4e9   :  { %1675 = vmax.xlane.f32.xlu0 %v1674_v11 }
 0x4ea   :  { %1672 = vmax.xlane.f32.xlu1 %v1671_v18 }
 0x4f1   :  { %v5081_v22 = vpop.f32.mrb[18].mxu0 }
 0x4f2   :  { %v6188_v32 = vadd.f32 %v5081_v22, %v6026_v8  ;;  %v1585_v33 = vpop.f32.mrb[19].mxu0  ;;  %v6202_v8 = vpop.permute.xlu0 %467 }
 0x4f3   :  { %v6191_v34 = vadd.f32 %v1585_v33, %v6046_v25 }
 0x4f4   :  { %v1692_v36 = vsel %vm1604_vm3, %v6188_v32, -inf }
 0x4f5   :  { %v5084_v39 = vpop.f32.mrb[20].mxu0  ;;  %1693 = vmax.xlane.f32.xlu0 %v1692_v36  ;;  %v1689_v41 = vsel %vm1604_vm3, %v6191_v34, -inf }
 0x4f6   :  { %v6198_v54 = vadd.f32 %v5084_v39, %v6054_v29  ;;  %v6200_v56 = vpop.f32.mrb[21].mxu0  ;;  %1690 = vmax.xlane.f32.xlu1 %v1689_v41  ;;  %v6206_v59 = vpop.permute.xlu0 %459 }
 0x4f8   :  { %v1698_v25 = vsel %vm1604_vm3, %v6198_v54, -inf }
 0x4f9   :  { %1699 = vmax.xlane.f32.xlu0 %v1698_v25 }
 0x4fa   :  { %v6208_v26 = vpop.permute.xlu0 %473 }
 0x4fe   :  { %v6210_v38 = vpop.permute.xlu0 %491 }
 0x502   :  { %v6214_v29 = vpop.permute.xlu0 %483 }
 0x503   :  { %7124 = vst [vmem:[#allocation3_spill] sm:$0xff] %v6214_v29 }
 0x505   :  { %v1610_v53 = vpop.xlane.xlu1 %1609 }
 0x506   :  { %v1702_v47 = vsub.f32 %v6029_v14, %v1610_v53 }
 0x508   :  { %v1735_v10 = vmul.f32 1.442695, %v1702_v47 }
 0x50a   :  { %5413 = vpow2.f32 %v1735_v10  ;;  %v6232_v39 = vpop.xlane.xlu1 %1612 }
 0x50f   :  { %497 = vrot.lane.b32.xlu0 %v5727_v62, %s5549_s13 }
 0x514   :  { %v6216_v46 = vpop.xlane.xlu0 %1606  ;;  %v6221_v22 = vpop.eup %5413 }
 0x515   :  { %v1800_v33 = vsel %vm1604_vm3, %v6221_v22, 0.0 }
 0x518   :  { %v1616_v2 = vpop.xlane.xlu0 %1615 }
 0x519   :  { %v1704_v11 = vsub.f32 %v6057_v30, %v1616_v2 }
 0x51b   :  { %v1739_v18 = vmul.f32 1.442695, %v1704_v11 }
 0x51d   :  { %5415 = vpow2.f32 %v1739_v18 }
 0x527   :  { %v6226_v36 = vpop.eup %5415 }
 0x528   :  { %v1806_v14 = vsel %vm1604_vm3, %v6226_v36, 0.0 }
 0x529   :  { %2053 = vxpose.xlu1.b32.start [1/4] (short) (narrow) %v5839_v16, 8 }
 0x52d   :  { %2054 = vxpose.xlu1.b32.cont [2/4] (short) (narrow) %v5871_v27, 8 }
 0x52e   :  { %1801 = vadd.xlane.f32.xlu0 %v1800_v33 }
 0x531   :  { %2055 = vxpose.xlu1.b32.cont [3/4] (short) (narrow) %v5949_v50, 8 }
 0x532   :  { %1807 = vadd.xlane.f32.xlu0 %v1806_v14 }
 0x535   :  { %2056 = vxpose.xlu1.b32.end [4/4] (short) (narrow) %v450_v24, 8 }
 0x542   :  { %v1622_v30 = vpop.xlane.xlu0 %1621 }
 0x543   :  { %v1706_v16 = vsub.f32 %v6064_v35, %v1622_v30 }
 0x545   :  { %v1743_v41 = vmul.f32 1.442695, %v1706_v16 }
 0x547   :  { %5417 = vpow2.f32 %v1743_v41  ;;  %v6234_v27 = vpop.xlane.xlu0 %1639 }
 0x548   :  { %v1637_v25 = vpop.xlane.xlu1 %1636 }
 0x549   :  { %v1711_v53 = vsub.f32 %v6072_v44, %v1637_v25 }
 0x54b   :  { %v1753_v47 = vmul.f32 1.442695, %v1711_v53  ;;  %v6237_v2 = vpop.xlane.xlu0 %1618 }
 0x54c   :  { %v1625_v10 = vpop.xlane.xlu1 %1624 }
 0x54d   :  { %5419 = vpow2.f32 %v1753_v47  ;;  %v1707_v11 = vsub.f32 %v6080_v17, %v1625_v10 }
 0x54f   :  { %v6241_v24 = vpop.xlane.xlu0 %1627  ;;  %v1745_v16 = vmul.f32 1.442695, %v1707_v11 }
 0x551   :  { %v6239_v50 = vpop.eup %5417 }
 0x552   :  { %v1812_v35 = vsel %vm1604_vm3, %v6239_v50, 0.0 }
 0x553   :  { %455 = vrot.lane.b32.xlu1 %v5725_v60, %s5550_s14  ;;  %1813 = vadd.xlane.f32.xlu0 %v1812_v35 }
 0x556   :  { %v1658_v18 = vpop.xlane.xlu0 %1657 }
 0x557   :  { %v6248_v44 = vpop.eup %5419  ;;  %v1718_v33 = vsub.f32 %v6094_v58, %v1658_v18  ;;  %457 = vrot.lane.b32.xlu1 %v5749_v63, %s5550_s14  ;;  %v6253_v14 = vpop.xlane.xlu1 %1654 }
 0x558   :  { %v1827_v30 = vsel %vm1604_vm3, %v6248_v44, 0.0 }
 0x559   :  { %v1767_v41 = vmul.f32 1.442695, %v1718_v33  ;;  %1828 = vadd.xlane.f32.xlu0 %v1827_v30 }
 0x55a   :  { %v6257_v25 = vpop.xlane.xlu0 %1633 }
 0x55b   :  { %5421 = vpow2.f32 %v1767_v41  ;;  %469 = vrot.lane.b32.xlu1 %v5749_v63, %s5547_s11  ;;  %v6261_v17 = vpop.xlane.xlu1 %1630 }
 0x55c   :  { %5423 = vpow2.f32 %v1745_v16 }
 0x55e   :  { %v6263_v58 = vpop.xlane.xlu0 %1663 }
 0x55f   :  { %471 = vrot.lane.b32.xlu1 %v5773_v1, %s5547_s11  ;;  %v1661_v53 = vpop.xlane.xlu1 %1660  ;;  %s5562_s11 = smov 56  }
 0x560   :  { %v1719_v47 = vsub.f32 %v6115_v9, %v1661_v53 }
 0x562   :  { %v1769_v10 = vmul.f32 1.442695, %v1719_v47  ;;  %v6268_v35 = vpop.xlane.xlu0 %1645 }
 0x563   :  { %461 = vrot.lane.b32.xlu1 %v5727_v62, %s5550_s14  ;;  %v6272_v11 = vpop.xlane.xlu1 %1642 }
 0x564   :  { %5425 = vpow2.f32 %v1769_v10 }
 0x565   :  { %v6274_v18 = vpop.eup %5421 }
 0x566   :  { %v1682_v33 = vpop.xlane.xlu0 %1681  ;;  %v1848_v30 = vsel %vm1604_vm3, %v6274_v18, 0.0  ;;  %v6278_v16 = vpop.eup %5423 }
 0x567   :  { %v1726_v41 = vsub.f32 %v6134_v37, %v1682_v33  ;;  %479 = vrot.lane.b32.xlu1 %v5725_v60, %s5551_s15  ;;  %v6283_v9 = vpop.xlane.xlu1 %1678  ;;  %1849 = vadd.xlane.f32.xlu0 %v1848_v30  ;;  %v1815_v10 = vsel %vm1604_vm3, %v6278_v16, 0.0 }
 0x569   :  { %v1783_v53 = vmul.f32 1.442695, %v1726_v41 }
 0x56a   :  { %v1652_v47 = vpop.xlane.xlu0 %1651 }
 0x56b   :  { %5427 = vpow2.f32 %v1783_v53  ;;  %v1716_v3 = vsub.f32 %v6140_v43, %v1652_v47  ;;  %481 = vrot.lane.b32.xlu1 %v5749_v63, %s5551_s15  ;;  %v1649_v15 = vpop.xlane.xlu1 %1648  ;;  %1816 = vadd.xlane.f32.xlu0 %v1815_v10 }
 0x56c   :  { %v1715_v37 = vsub.f32 %v6145_v55, %v1649_v15 }
 0x56d   :  { %v1763_v33 = vmul.f32 1.442695, %v1716_v3 }
 0x56e   :  { %v6291_v60 = vpop.eup %5425  ;;  %v1761_v29 = vmul.f32 1.442695, %v1715_v37  ;;  %v6293_v30 = vpop.xlane.xlu0 %1687 }
 0x56f   :  { %5429 = vpow2.f32 %v1763_v33  ;;  %493 = vrot.lane.b32.xlu1 %v5749_v63, %s5549_s13  ;;  %v1685_v41 = vpop.xlane.xlu1 %1684  ;;  %v1851_v43 = vsel %vm1604_vm3, %v6291_v60, 0.0 }
 0x570   :  { %v1727_v53 = vsub.f32 %v6155_v45, %v1685_v41  ;;  %1852 = vadd.xlane.f32.xlu0 %v1851_v43  ;;  %5431 = vpow2.f32 %v1761_v29 }
 0x572   :  { %v1785_v47 = vmul.f32 1.442695, %v1727_v53  ;;  %v1670_v15 = vpop.xlane.xlu0 %1669 }
 0x573   :  { %v1722_v3 = vsub.f32 %v6160_v51, %v1670_v15  ;;  %495 = vrot.lane.b32.xlu1 %v5773_v1, %s5549_s13  ;;  %v6303_v55 = vpop.xlane.xlu1 %1666 }
 0x574   :  { %5433 = vpow2.f32 %v1785_v47 }
 0x575   :  { %v6305_v10 = vpop.eup %5427  ;;  %v1775_v63 = vmul.f32 1.442695, %v1722_v3 }
 0x576   :  { %v1676_v37 = vpop.xlane.xlu0 %1675  ;;  %v1872_v33 = vsel %vm1604_vm3, %v6305_v10, 0.0 }
 0x577   :  { %v1724_v45 = vsub.f32 %v6170_v57, %v1676_v37  ;;  %v1673_v29 = vpop.xlane.xlu1 %1672  ;;  %1873 = vadd.xlane.f32.xlu0 %v1872_v33  ;;  %5435 = vpow2.f32 %v1775_v63  ;;  %v1701_v33 = vsub.f32 %v6049_v28, %v6216_v46 }
 0x578   :  { %v1723_v1 = vsub.f32 %v6175_v5, %v1673_v29 }
 0x579   :  { %v6310_v41 = vpop.eup %5429  ;;  %v1779_v51 = vmul.f32 1.442695, %v1724_v45 }
 0x57a   :  { %v1842_v43 = vsel %vm1604_vm3, %v6310_v41, 0.0  ;;  %v6315_v53 = vpop.eup %5431  ;;  %v1777_v47 = vmul.f32 1.442695, %v1723_v1 }
 0x57b   :  { %1843 = vadd.xlane.f32.xlu0 %v1842_v43  ;;  %5437 = vpow2.f32 %v1779_v51  ;;  %v1839_v15 = vsel %vm1604_vm3, %v6315_v53, 0.0 }
 0x57c   :  { %5439 = vpow2.f32 %v1777_v47  ;;  %v1703_v47 = vsub.f32 %v6039_v23, %v6232_v39  ;;  %v1705_v39 = vsub.f32 %v6075_v52, %v6237_v2 }
 0x57e   :  { %v6319_v57 = vpop.eup %5433  ;;  %v1737_v46 = vmul.f32 1.442695, %v1703_v47 }
 0x57f   :  { %1840 = vadd.xlane.f32.xlu0 %v1839_v15  ;;  %v1875_v63 = vsel %vm1604_vm3, %v6319_v57, 0.0  ;;  %v1733_v15 = vmul.f32 1.442695, %v1701_v33  ;;  %v6349_v33 = vadd.f32 %v6200_v56, %v6036_v20  ;;  %v1717_v56 = vsub.f32 %v6097_v48, %v6253_v14 }
 0x580   :  { %v1720_v48 = vsub.f32 %v6110_v4, %v6263_v58  ;;  %v1714_v4 = vsub.f32 %v6120_v12, %v6268_v35 }
 0x581   :  { %v6323_v5 = vpop.eup %5435 }
 0x582   :  { %v1694_v3 = vpop.xlane.xlu0 %1693  ;;  %v1860_v51 = vsel %vm1604_vm3, %v6323_v5, 0.0 }
 0x583   :  { %v1730_v37 = vsub.f32 %v6188_v32, %v1694_v3  ;;  %1876 = vadd.xlane.f32.xlu0 %v1875_v63  ;;  %v1712_v63 = vsub.f32 %v6069_v42, %v6234_v27  ;;  %v1741_v27 = vmul.f32 1.442695, %v1705_v39 }
 0x585   :  { %v1791_v45 = vmul.f32 1.442695, %v1730_v37  ;;  %v6330_v1 = vpop.eup %5437  ;;  %v1755_v23 = vmul.f32 1.442695, %v1712_v63 }
 0x586   :  { %v1700_v29 = vpop.xlane.xlu0 %1699  ;;  %v1866_v3 = vsel %vm1604_vm3, %v6330_v1, 0.0  ;;  %v6337_v28 = vpop.eup %5439 }
 0x587   :  { %5441 = vpow2.f32 %v1791_v45  ;;  %v1732_v43 = vsub.f32 %v6198_v54, %v1700_v29  ;;  %1861 = vadd.xlane.f32.xlu0 %v1860_v51  ;;  %v1863_v54 = vsel %vm1604_vm3, %v6337_v28, 0.0  ;;  %v1708_v29 = vsub.f32 %v6085_v13, %v6241_v24 }
 0x588   :  { %v1695_v51 = vsel %vm1604_vm3, %v6349_v33, -inf  ;;  %v1765_v13 = vmul.f32 1.442695, %v1717_v56  ;;  %v1710_v24 = vsub.f32 %v6100_v49, %v6257_v25  ;;  %v1709_v49 = vsub.f32 %v6105_v0, %v6261_v17 }
 0x589   :  { %v1795_v32 = vmul.f32 1.442695, %v1732_v43  ;;  %v1747_v20 = vmul.f32 1.442695, %v1708_v29  ;;  %v1771_v25 = vmul.f32 1.442695, %v1720_v48  ;;  %v1713_v17 = vsub.f32 %v6125_v19, %v6272_v11 }
 0x58a   :  { %v1759_v0 = vmul.f32 1.442695, %v1714_v4  ;;  %v7119_v19 = vmov 0.0|0.0   ;;  %v1728_v48 = vsub.f32 %v6150_v31, %v6293_v30 }
 0x58b   :  { %5443 = vpow2.f32 %v1795_v32  ;;  %1867 = vadd.xlane.f32.xlu0 %v1866_v3  ;;  %v1751_v3 = vmul.f32 1.442695, %v1710_v24  ;;  %v1757_v29 = vmul.f32 1.442695, %v1713_v17  ;;  %5215 = vmatprep.subr.bf16.mxu1 %v7119_v19  ;;  %v7127_v24 = vmov 0.0  }
 0x58c   :  { %5445 = vpow2.f32 %v1733_v15  ;;  %5223 = vmatprep.subr.bf16.mxu0 %v7119_v19  ;;  %5093 = vmatprep.mubr.msk.f32.mxu1 %vm5553_vm4, %v7127_v24 }
 0x58d   :  { %5447 = vpow2.f32 %v1737_v46  ;;  %5104 = vmatprep.mubr.msk.f32.mxu0 %vm5553_vm4, %v7127_v24 }
 0x58e   :  { %5449 = vpow2.f32 %v1755_v23  ;;  %v1749_v23 = vmul.f32 1.442695, %v1709_v49  ;;  %v1787_v49 = vmul.f32 1.442695, %v1728_v48 }
 0x58f   :  { %1864 = vadd.xlane.f32.xlu0 %v1863_v54  ;;  %5451 = vpow2.f32 %v1741_v27 }
 0x590   :  { %5453 = vpow2.f32 %v1747_v20 }
 0x591   :  { %v6343_v37 = vpop.eup %5441  ;;  %5455 = vpow2.f32 %v1765_v13 }
 0x592   :  { %7125 = vst [vmem:[#allocation4_spill] sm:$0xff] %v6343_v37  ;;  %v1884_v45 = vsel %vm1604_vm3, %v6343_v37, 0.0  ;;  %5457 = vpow2.f32 %v1751_v3 }
 0x593   :  { %1885 = vadd.xlane.f32.xlu0 %v1884_v45  ;;  %5459 = vpow2.f32 %v1771_v25  ;;  %v1721_v25 = vsub.f32 %v6165_v61, %v6303_v55 }
 0x594   :  { %5461 = vpow2.f32 %v1749_v23 }
 0x595   :  { %v6353_v42 = vpop.eup %5443  ;;  %5463 = vpow2.f32 %v1759_v0  ;;  %v1773_v23 = vmul.f32 1.442695, %v1721_v25 }
 0x596   :  { %7126 = vst [vmem:[#allocation5_spill] sm:$0xff] %v6353_v42  ;;  %v1890_v52 = vsel %vm1604_vm3, %v6353_v42, 0.0  ;;  %v6361_v2 = vpop.eup %5445  ;;  %5465 = vpow2.f32 %v1757_v29 }
 0x597   :  { %1696 = vmax.xlane.f32.xlu1 %v1695_v51  ;;  %1891 = vadd.xlane.f32.xlu0 %v1890_v52  ;;  %v1797_v43 = vsel %vm1604_vm3, %v6361_v2, 0.0  ;;  %v6367_v47 = vpop.eup %5447 }
 0x598   :  { %v1803_v15 = vsel %vm1604_vm3, %v6367_v47, 0.0  ;;  %v6373_v32 = vpop.eup %5449 }
 0x599   :  { %v1830_v14 = vsel %vm1604_vm3, %v6373_v32, 0.0  ;;  %v6379_v46 = vpop.eup %5451 }
 0x59a   :  { %v1809_v63 = vsel %vm1604_vm3, %v6379_v46, 0.0  ;;  %v6385_v54 = vpop.eup %5453 }
 0x59b   :  { %1798 = vadd.xlane.f32.xlu1 %v1797_v43  ;;  %v1818_v58 = vsel %vm1604_vm3, %v6385_v54, 0.0  ;;  %v6391_v39 = vpop.eup %5455 }
 0x59c   :  { %v1845_v45 = vsel %vm1604_vm3, %v6391_v39, 0.0  ;;  %v6397_v27 = vpop.eup %5457 }
 0x59d   :  { %v1824_v12 = vsel %vm1604_vm3, %v6397_v27, 0.0  ;;  %v6401_v35 = vpop.eup %5459 }
 0x59e   :  { %v1854_v51 = vsel %vm1604_vm3, %v6401_v35, 0.0  ;;  %v6405_v52 = vpop.eup %5461 }
 0x59f   :  { %1804 = vadd.xlane.f32.xlu1 %v1803_v15  ;;  %v1821_v11 = vsel %vm1604_vm3, %v6405_v52, 0.0  ;;  %v6411_v20 = vpop.eup %5463  ;;  %v1725_v15 = vsub.f32 %v6137_v40, %v6283_v9 }
 0x5a0   :  { %v1836_v56 = vsel %vm1604_vm3, %v6411_v20, 0.0  ;;  %v6415_v43 = vpop.eup %5465 }
 0x5a1   :  { %v1833_v13 = vsel %vm1604_vm3, %v6415_v43, 0.0  ;;  %v1781_v3 = vmul.f32 1.442695, %v1725_v15 }
 0x5a3   :  { %1831 = vadd.xlane.f32.xlu1 %v1830_v14  ;;  %v1691_v14 = vpop.xlane.xlu1 %1690  ;;  %5467 = vpow2.f32 %v1781_v3 }
 0x5a4   :  { %5469 = vpow2.f32 %v1787_v49  ;;  %v1729_v4 = vsub.f32 %v6191_v34, %v1691_v14 }
 0x5a5   :  { %5471 = vpow2.f32 %v1773_v23 }
 0x5a6   :  { %v1789_v40 = vmul.f32 1.442695, %v1729_v4 }
 0x5a7   :  { %1810 = vadd.xlane.f32.xlu1 %v1809_v63 }
 0x5a8   :  { %5473 = vpow2.f32 %v1789_v40 }
 0x5a9   :  { %v6431_v63 = vpop.trf.xlu1 }
 0x5ab   :  { %1819 = vadd.xlane.f32.xlu1 %v1818_v58 }
 0x5ad   :  { %v6436_v9 = vpop.eup %5467 }
 0x5ae   :  { %v1869_v30 = vsel %vm1604_vm3, %v6436_v9, 0.0  ;;  %v6442_v58 = vpop.eup %5469 }
 0x5af   :  { %1846 = vadd.xlane.f32.xlu1 %v1845_v45  ;;  %v1878_v61 = vsel %vm1604_vm3, %v6442_v58, 0.0  ;;  %v6446_v55 = vpop.eup %5471 }
 0x5b0   :  { %v1857_v0 = vsel %vm1604_vm3, %v6446_v55, 0.0 }
 0x5b2   :  { %v6450_v17 = vpop.eup %5473 }
 0x5b3   :  { %1825 = vadd.xlane.f32.xlu1 %v1824_v12  ;;  %v1881_v29 = vsel %vm1604_vm3, %v6450_v17, 0.0 }
 0x5b7   :  { %1855 = vadd.xlane.f32.xlu1 %v1854_v51 }
 0x5bb   :  { %1822 = vadd.xlane.f32.xlu1 %v1821_v11 }
 0x5bf   :  { %1837 = vadd.xlane.f32.xlu1 %v1836_v56  ;;  %v6460_v56 = vpop.permute.xlu0 %497 }
 0x5c3   :  { %1834 = vadd.xlane.f32.xlu1 %v1833_v13  ;;  %v1802_v15 = vpop.xlane.xlu0 %1801 }
 0x5c4   :  { %5475 = vrcp.f32 %v1802_v15 }
 0x5c7   :  { %v1808_v48 = vpop.xlane.xlu0 %1807 }
 0x5d4   :  { %485 = vrot.lane.b32.xlu1 %v5727_v62, %s5551_s15  ;;  %v6434_v62 = vpop.permute.xlu1 %455 }
 0x5d8   :  { %v6438_v31 = vpop.permute.xlu1 %457 }
 0x5dc   :  { %v470_v34 = vpop.permute.xlu1 %469 }
 0x5e0   :  { %v472_v45 = vpop.permute.xlu1 %471  ;;  %v1814_v23 = vpop.xlane.xlu0 %1813 }
 0x5e4   :  { %v6454_v12 = vpop.permute.xlu1 %461 }
 0x5e8   :  { %v6456_v51 = vpop.permute.xlu1 %479 }
 0x5ec   :  { %v6458_v11 = vpop.permute.xlu1 %481 }
 0x5f0   :  { %v6462_v13 = vpop.permute.xlu1 %493 }
 0x5f4   :  { %v6464_v3 = vpop.permute.xlu1 %495 }
 0x5f8   :  { %1870 = vadd.xlane.f32.xlu1 %v1869_v30  ;;  %v1829_v30 = vpop.xlane.xlu0 %1828 }
 0x5fc   :  { %1879 = vadd.xlane.f32.xlu1 %v1878_v61 }
 0x600   :  { %1858 = vadd.xlane.f32.xlu1 %v1857_v0  ;;  %v5476_v0 = vpop.eup %5475 }
 0x601   :  { %v1926_v15 = vmul.f32 %v5476_v0, %v6221_v22 }
 0x604   :  { %1882 = vadd.xlane.f32.xlu1 %v1881_v29  ;;  %v6467_v29 = vpop.xlane.xlu0 %1849 }
 0x624   :  { %v1697_v14 = vpop.xlane.xlu1 %1696 }
 0x625   :  { %v1731_v49 = vsub.f32 %v6349_v33, %v1697_v14 }
 0x627   :  { %v1793_v25 = vmul.f32 1.442695, %v1731_v49 }
 0x628   :  { %v1799_v4 = vpop.xlane.xlu1 %1798 }
 0x629   :  { %5477 = vpow2.f32 %v1793_v25 }
 0x62a   :  { %5479 = vrcp.f32 %v1799_v4 }
 0x62c   :  { %v1805_v40 = vpop.xlane.xlu1 %1804 }
 0x62d   :  { %5481 = vrcp.f32 %v1805_v40 }
 0x62e   :  { %5483 = vrcp.f32 %v1808_v48 }
 0x62f   :  { %5485 = vrcp.f32 %v1814_v23  ;;  %v1817_v23 = vpop.xlane.xlu0 %1816 }
 0x630   :  { %v1832_v61 = vpop.xlane.xlu1 %1831 }
 0x633   :  { %v6469_v19 = vpop.eup %5477 }
 0x634   :  { %v5480_v42 = vpop.eup %5479  ;;  %v1811_v37 = vpop.xlane.xlu1 %1810  ;;  %v1887_v33 = vsel %vm1604_vm3, %v6469_v19, 0.0 }
 0x635   :  { %v1925_v14 = vmul.f32 %v5480_v42, %v6361_v2  ;;  %5487 = vrcp.f32 %v1811_v37  ;;  %1888 = vadd.xlane.f32.xlu0 %v1887_v33  ;;  %v7130_v42 = vmov 0.0|0.0  }
 0x637   :  { %2117 = vxpose.xlu1.b32.start [1/4] (short) (narrow) %v6202_v8, 8  ;;  %v5216_v49 = vpack.c.bf16 %v1926_v15, %v1925_v14  ;;  %v5482_v25 = vpop.eup %5481 }
 0x638   :  { %v1820_v4 = vpop.xlane.xlu1 %1819  ;;  %v5484_v22 = vpop.eup %5483  ;;  %v1927_v37 = vmul.f32 %v5482_v25, %v6367_v47 }
 0x639   :  { %5489 = vrcp.f32 %v1820_v4  ;;  %5218 = vmatpush3.bf16.xpose.msk.msra.mxu1 %vm6477_vm5, %v5216_v49  ;;  %v5486_v40 = vpop.eup %5485  ;;  %v1928_v0 = vmul.f32 %v5484_v22, %v6226_v36  ;;  %v1853_v49 = vpop.xlane.xlu0 %1852 }
 0x63a   :  { %5219 = vmatprep.subr.bf16.mxu1 %v7130_v42  ;;  %5491 = vrcp.f32 %v1817_v23  ;;  %v1930_v15 = vmul.f32 %v5486_v40, %v6239_v50 }
 0x63b   :  { %2118 = vxpose.xlu1.b32.cont [2/4] (short) (narrow) %v470_v34, 8  ;;  %v5220_v33 = vpack.c.bf16 %v1928_v0, %v1927_v37 }
 0x63c   :  { %v1847_v2 = vpop.xlane.xlu1 %1846 }
 0x63f   :  { %v5488_v8 = vpop.eup %5487  ;;  %2119 = vxpose.xlu1.b32.cont [3/4] (short) (narrow) %v472_v45, 8  ;;  %v6495_v45 = vpop.xlane.xlu0 %1873 }
 0x640   :  { %v1929_v14 = vmul.f32 %v5488_v8, %v6379_v46  ;;  %v1826_v4 = vpop.xlane.xlu1 %1825 }
 0x641   :  { %5222 = vmatpush3.bf16.xpose.msk.msra.mxu1 %vm6477_vm5, %v5220_v33  ;;  %5493 = vrcp.f32 %v1826_v4 }
 0x642   :  { %v5224_v23 = vpack.c.bf16 %v1930_v15, %v1929_v14  ;;  %5231 = vmatprep.subr.bf16.mxu1 %v7130_v42 }
 0x643   :  { %v5490_v47 = vpop.eup %5489  ;;  %2120 = vxpose.xlu1.b32.end [4/4] (short) (narrow) %v6208_v26, 8  ;;  %v1844_v22 = vpop.xlane.xlu0 %1843 }
 0x644   :  { %v1856_v34 = vpop.xlane.xlu1 %1855  ;;  %5226 = vmatpush3.bf16.xpose.msk.msra.mxu0 %vm6477_vm5, %v5224_v23  ;;  %v5492_v36 = vpop.eup %5491  ;;  %v1932_v50 = vmul.f32 %v5490_v47, %v6385_v54 }
 0x645   :  { %5227 = vmatprep.subr.bf16.mxu0 %v7130_v42  ;;  %v1931_v46 = vmul.f32 %v5492_v36, %v6278_v16 }
 0x647   :  { %2181 = vxpose.xlu1.b32.start [1/4] (short) (narrow) %v6210_v38, 8  ;;  %v5228_v25 = vpack.c.bf16 %v1932_v50, %v1931_v46  ;;  %v1841_v16 = vpop.xlane.xlu0 %1840 }
 0x648   :  { %5094 = vmatmul.mubr.msk.f32.vlgmr.msra.gmra.mrb[26].mxu1 %vm1604_vm3, %v6003_v6  ;;  %v1823_v26 = vpop.xlane.xlu1 %1822 }
 0x649   :  { %5495 = vrcp.f32 %v1823_v26  ;;  %5115 = vmatprep.mubr.msk.f32.mxu1 %vm5553_vm4, %v7127_v24 }
 0x64a   :  { %5497 = vrcp.f32 %v1832_v61 }
 0x64b   :  { %2182 = vxpose.xlu1.b32.cont [2/4] (short) (narrow) %v6462_v13, 8  ;;  %5499 = vrcp.f32 %v1829_v30  ;;  %v5494_v38 = vpop.eup %5493 }
 0x64c   :  { %v1838_v37 = vpop.xlane.xlu1 %1837  ;;  %5230 = vmatpush3.bf16.xpose.msk.msra.mxu0 %vm6477_vm5, %v5228_v25  ;;  %v1934_v13 = vmul.f32 %v5494_v38, %v6397_v27 }
 0x64d   :  { %5239 = vmatprep.subr.bf16.mxu0 %v7130_v42  ;;  %5501 = vrcp.f32 %v1838_v37 }
 0x64f   :  { %2183 = vxpose.xlu1.b32.cont [3/4] (short) (narrow) %v6464_v3, 8 }
 0x650   :  { %v1835_v6 = vpop.xlane.xlu1 %1834 }
 0x651   :  { %5503 = vrcp.f32 %v1835_v6 }
 0x652   :  { %5505 = vrcp.f32 %v1841_v16 }
 0x653   :  { %v5496_v54 = vpop.eup %5495  ;;  %2184 = vxpose.xlu1.b32.end [4/4] (short) (narrow) %v6460_v56, 8  ;;  %5105 = vmatmul.mubr.msk.f32.vlgmr.msra.gmra.mrb[22].mxu0 %vm1604_vm3, %v6179_v7  ;;  %5507 = vrcp.f32 %v1847_v2 }
 0x654   :  { %v1933_v61 = vmul.f32 %v5496_v54, %v6405_v52  ;;  %5126 = vmatprep.mubr.msk.f32.mxu0 %vm5553_vm4, %v7127_v24  ;;  %5509 = vrcp.f32 %v6467_v29  ;;  %v5498_v30 = vpop.eup %5497 }
 0x655   :  { %5511 = vrcp.f32 %v1844_v22  ;;  %v5500_v40 = vpop.eup %5499  ;;  %v1936_v7 = vmul.f32 %v5498_v30, %v6373_v32 }
 0x656   :  { %v5232_v3 = vpack.c.bf16 %v1934_v13, %v1933_v61  ;;  %v1935_v52 = vmul.f32 %v5500_v40, %v6248_v44  ;;  %5513 = vrcp.f32 %v1856_v34 }
 0x657   :  { %v5502_v56 = vpop.eup %5501  ;;  %5515 = vrcp.f32 %v1853_v49 }
 0x658   :  { %5234 = vmatpush3.bf16.xpose.msk.msra.mxu1 %vm6477_vm5, %v5232_v3  ;;  %v1938_v0 = vmul.f32 %v5502_v56, %v6411_v20  ;;  %v5236_v8 = vpack.c.bf16 %v1936_v7, %v1935_v52  ;;  %5517 = vrcp.f32 %v6495_v45  ;;  %v7132_v56 = vld [vmem:[#allocation4_spill] sm:$0xff] }
 0x659   :  { %5235 = vmatprep.subr.bf16.mxu1 %v7130_v42 }
 0x65b   :  { %v5504_v27 = vpop.eup %5503 }
 0x65c   :  { %v1937_v2 = vmul.f32 %v5504_v27, %v6415_v43  ;;  %v5506_v29 = vpop.eup %5505 }
 0x65d   :  { %v5508_v15 = vpop.eup %5507  ;;  %v1939_v44 = vmul.f32 %v5506_v29, %v6315_v53 }
 0x65e   :  { %v5240_v33 = vpack.c.bf16 %v1938_v0, %v1937_v2  ;;  %v5510_v14 = vpop.eup %5509  ;;  %v1941_v20 = vmul.f32 %v5508_v15, %v6391_v39  ;;  %v486_v39 = vpop.permute.xlu1 %485  ;;  %v7133_v2 = vld [vmem:[#allocation5_spill] sm:$0xff] }
 0x65f   :  { %v5512_v32 = vpop.eup %5511  ;;  %v1942_v43 = vmul.f32 %v5510_v14, %v6274_v18 }
 0x660   :  { %5238 = vmatpush3.bf16.xpose.msk.msra.mxu1 %vm6477_vm5, %v5236_v8  ;;  %5242 = vmatpush3.bf16.xpose.msk.msra.mxu0 %vm6477_vm5, %v5240_v33  ;;  %v1940_v4 = vmul.f32 %v5512_v32, %v6310_v41  ;;  %v5514_v47 = vpop.eup %5513 }
 0x661   :  { %5243 = vmatprep.subr.bf16.mxu0 %v7130_v42  ;;  %5247 = vmatprep.subr.bf16.mxu1 %v7130_v42  ;;  %v5248_v23 = vpack.c.bf16 %v1942_v43, %v1941_v20  ;;  %v5516_v53 = vpop.eup %5515  ;;  %v1944_v18 = vmul.f32 %v5514_v47, %v6401_v35 }
 0x662   :  { %2085 = vxpose.xlu0.b32.start [1/4] (short) (narrow) %v6434_v62, 8  ;;  %v5244_v49 = vpack.c.bf16 %v1940_v4, %v1939_v44  ;;  %v5518_v34 = vpop.eup %5517 }
 0x663   :  { %v1950_v36 = vmul.f32 %v5518_v34, %v6305_v10 }
 0x666   :  { %2086 = vxpose.xlu0.b32.cont [2/4] (short) (narrow) %v6438_v31, 8 }
 0x667   :  { %5116 = vmatmul.mubr.msk.f32.vlgmr.msra.gmra.mrb[28].mxu1 %vm1604_vm3, %v6185_v21  ;;  %v1943_v21 = vmul.f32 %v5516_v53, %v6291_v60  ;;  %v1877_v60 = vpop.xlane.xlu0 %1876 }
 0x668   :  { %5246 = vmatpush3.bf16.xpose.msk.msra.mxu0 %vm6477_vm5, %v5244_v49  ;;  %5250 = vmatpush3.bf16.xpose.msk.msra.mxu1 %vm6477_vm5, %v5248_v23 }
 0x669   :  { %5251 = vmatprep.subr.bf16.mxu1 %v7130_v42  ;;  %5255 = vmatprep.subr.bf16.mxu0 %v7130_v42  ;;  %v5252_v41 = vpack.c.bf16 %v1944_v18, %v1943_v21 }
 0x66a   :  { %2087 = vxpose.xlu0.b32.cont [3/4] (short) (narrow) %v6206_v59, 8  ;;  %5137 = vmatprep.mubr.msk.f32.mxu1 %vm5553_vm4, %v7127_v24  ;;  %v7131_v59 = vld [vmem:[#allocation3_spill] sm:$0xff] }
 0x66b   :  { %v1862_v35 = vpop.xlane.xlu0 %1861 }
 0x66e   :  { %2088 = vxpose.xlu0.b32.end [4/4] (short) (narrow) %v6454_v12, 8 }
 0x66f   :  { %5127 = vmatmul.mubr.msk.f32.vlgmr.msra.gmra.mrb[24].mxu0 %vm1604_vm3, %v6431_v63  ;;  %v1868_v62 = vpop.xlane.xlu0 %1867 }
 0x670   :  { %5254 = vmatpush3.bf16.xpose.msk.msra.mxu1 %vm6477_vm5, %v5252_v41  ;;  %5148 = vmatprep.mubr.msk.f32.mxu0 %vm5553_vm4, %v7127_v24 }
 0x671   :  { %5263 = vmatprep.subr.bf16.mxu1 %v7130_v42 }
 0x672   :  { %2149 = vxpose.xlu0.b32.start [1/4] (short) (narrow) %v6456_v51, 8 }
 0x673   :  { %v1865_v51 = vpop.xlane.xlu0 %1864 }
 0x676   :  { %2150 = vxpose.xlu0.b32.cont [2/4] (short) (narrow) %v6458_v11, 8 }
 0x677   :  { %v1886_v30 = vpop.xlane.xlu0 %1885 }
 0x67a   :  { %2151 = vxpose.xlu0.b32.cont [3/4] (short) (narrow) %v7131_v59, 8 }
 0x67e   :  { %2152 = vxpose.xlu0.b32.end [4/4] (short) (narrow) %v486_v39, 8 }
 0x685   :  { %v1871_v63 = vpop.xlane.xlu1 %1870 }
 0x686   :  { %5519 = vrcp.f32 %v1871_v63 }
 0x687   :  { %5521 = vrcp.f32 %v1877_v60 }
 0x689   :  { %v1880_v31 = vpop.xlane.xlu1 %1879 }
 0x68a   :  { %5523 = vrcp.f32 %v1880_v31 }
 0x68b   :  { %5525 = vrcp.f32 %v1862_v35 }
 0x68d   :  { %v1859_v12 = vpop.xlane.xlu1 %1858 }
 0x68e   :  { %5527 = vrcp.f32 %v1859_v12  ;;  %v5554_v12 = vmov 1983009808  }
 0x68f   :  { %5529 = vrcp.f32 %v1865_v51  ;;  %v3152_v34 = vunpack.c.l.s4 %v5554_v12 }
 0x690   :  { %v5520_v11 = vpop.eup %5519  ;;  %5531 = vrcp.f32 %v1868_v62 }
 0x691   :  { %v1949_v50 = vmul.f32 %v5520_v11, %v6436_v9  ;;  %v5522_v46 = vpop.eup %5521  ;;  %v3153_v11 = vunpack.c.0.s8 %v3152_v34 }
 0x692   :  { %v1951_v25 = vmul.f32 %v5522_v46, %v6319_v57 }
 0x693   :  { %v5264_v26 = vpack.c.bf16 %v1950_v36, %v1949_v50  ;;  %v5555_v50 = vmov 1934713408  }
 0x694   :  { %v5524_v45 = vpop.eup %5523  ;;  %v3216_v46 = vunpack.c.l.s4 %v5555_v50 }
 0x695   :  { %v1952_v22 = vmul.f32 %v5524_v45, %v6442_v58  ;;  %v5526_v37 = vpop.eup %5525  ;;  %v1883_v58 = vpop.xlane.xlu1 %1882  ;;  %v7134_v45 = vld [vmem:[#allocation2_spill] sm:$0xff] }
 0x696   :  { %v1946_v16 = vmul.f32 %v5526_v37, %v6323_v5  ;;  %5533 = vrcp.f32 %v1883_v58 }
 0x697   :  { %v5268_v6 = vpack.c.bf16 %v1952_v22, %v1951_v25  ;;  %5535 = vrcp.f32 %v1886_v30  ;;  %v6606_v25 = vsub.s32 %v3153_v11, %v7134_v45 }
 0x698   :  { %v5528_v38 = vpop.eup %5527 }
 0x699   :  { %v1945_v54 = vmul.f32 %v5528_v38, %v6446_v55  ;;  %v5530_v10 = vpop.eup %5529 }
 0x69a   :  { %v5532_v9 = vpop.eup %5531  ;;  %v1947_v61 = vmul.f32 %v5530_v10, %v6337_v28 }
 0x69b   :  { %v5256_v13 = vpack.c.bf16 %v1946_v16, %v1945_v54  ;;  %v1948_v57 = vmul.f32 %v5532_v9, %v6330_v1  ;;  %v1892_v1 = vpop.xlane.xlu0 %1891 }
 0x69c   :  { %5537 = vrcp.f32 %v1892_v1 }
 0x69d   :  { %5258 = vmatpush3.bf16.xpose.msk.msra.mxu0 %vm6477_vm5, %v5256_v13  ;;  %v5260_v3 = vpack.c.bf16 %v1948_v57, %v1947_v61 }
 0x69e   :  { %5259 = vmatprep.subr.bf16.mxu0 %v7130_v42 }
 0x6a0   :  { %v5534_v5 = vpop.eup %5533 }
 0x6a1   :  { %v5536_v55 = vpop.eup %5535  ;;  %v1953_v40 = vmul.f32 %v5534_v5, %v6450_v17 }
 0x6a2   :  { %v1954_v7 = vmul.f32 %v5536_v55, %v7132_v56 }
 0x6a4   :  { %v5272_v28 = vpack.c.bf16 %v1954_v7, %v1953_v40 }
 0x6a5   :  { %5262 = vmatpush3.bf16.xpose.msk.msra.mxu0 %vm6477_vm5, %v5260_v3 }
 0x6a6   :  { %5271 = vmatprep.subr.bf16.mxu0 %v7130_v42  ;;  %v5538_v0 = vpop.eup %5537 }
 0x6a7   :  { %v1956_v29 = vmul.f32 %v5538_v0, %v7133_v2 }
 0x6b7   :  { %v2133_v27 = vpop.trf.xlu1 }
 0x6b8   :  { %5149 = vmatmul.mubr.msk.f32.vlgmr.msra.gmra.mrb[26].mxu0 %vm1604_vm3, %v2133_v27 }
 0x6b9   :  { %5274 = vmatpush3.bf16.xpose.msk.msra.mxu0 %vm6477_vm5, %v5272_v28  ;;  %5170 = vmatprep.mubr.msk.f32.mxu0 %vm5553_vm4, %v7127_v24 }
 0x6ba   :  { %5275 = vmatprep.subr.bf16.mxu0 %v7130_v42 }
 0x6c2   :  { %v1889_v52 = vpop.xlane.xlu0 %1888 }
 0x6c3   :  { %5539 = vrcp.f32 %v1889_v52 }
 0x6c7   :  { %v2197_v15 = vpop.trf.xlu1 }
 0x6cd   :  { %v5540_v17 = vpop.eup %5539 }
 0x6ce   :  { %v1955_v8 = vmul.f32 %v5540_v17, %v6469_v19 }
 0x6d0   :  { %v5276_v33 = vpack.c.bf16 %v1956_v29, %v1955_v8 }
 0x6d2   :  { %5278 = vmatpush3.bf16.xpose.msk.msra.mxu0 %vm6477_vm5, %v5276_v33 }
 0x6d9   :  { %5171 = vmatmul.mubr.msk.f32.vlgmr.msra.gmra.mrb[28].mxu0 %vm1604_vm3, %v2197_v15 }
 0x6e2   :  { %v2101_v14 = vpop.trf.xlu0 }
 0x6e3   :  { %5138 = vmatmul.mubr.msk.f32.vlgmr.msra.gmra.mrb[30].mxu1 %vm1604_vm3, %v2101_v14 }
 0x6e4   :  { %5266 = vmatpush3.bf16.xpose.msk.msra.mxu1 %vm6477_vm5, %v5264_v26  ;;  %5159 = vmatprep.mubr.msk.f32.mxu1 %vm5553_vm4, %v7127_v24 }
 0x6e5   :  { %5267 = vmatprep.subr.bf16.mxu1 %v7130_v42 }
 0x6ec   :  { %5270 = vmatpush3.bf16.xpose.msk.msra.mxu1 %vm6477_vm5, %v5268_v6  ;;  %v3217_v6 = vunpack.c.0.s8 %v3216_v46 }
 0x6ee   :  { %v6611_v30 = vsub.s32 %v3217_v6, %v7134_v45 }
 0x6f2   :  { %v2165_v19 = vpop.trf.xlu0 }
 0x6f3   :  { %5160 = vmatmul.mubr.msk.f32.vlgmr.msra.gmra.mrb[32].mxu1 %vm1604_vm3, %v2165_v19 }
 0x6f4   :  { %4481 = vmatprep.mubr.f32.mxu1 %v7127_v24 }
 0x71b   :  { %v2294_v32 = vpop.f32.mrb[26].mxu1 }
 0x71c   :  { %2893 = vxpose.xlu0.b32.start.end [1/1] (short) (narrow) %v2294_v32, 32  ;;  %v5095_v44 = vpop.f32.mrb[27].mxu1 }
 0x726   :  { %v2379_v20 = vpop.f32.mrb[22].mxu0 }
 0x727   :  { %2925 = vxpose.xlu1.b32.start.end [1/1] (short) (narrow) %v2379_v20, 32  ;;  %v5106_v43 = vpop.f32.mrb[23].mxu0 }
 0x73a   :  { %v2464_v4 = vpop.f32.mrb[28].mxu1 }
 0x73b   :  { %2957 = vxpose.xlu0.b32.start.end [1/1] (short) (narrow) %v2464_v4, 32  ;;  %v5117_v49 = vpop.f32.mrb[29].mxu1 }
 0x742   :  { %v2549_v23 = vpop.f32.mrb[24].mxu0 }
 0x743   :  { %2989 = vxpose.xlu1.b32.start.end [1/1] (short) (narrow) %v2549_v23, 32  ;;  %v5128_v42 = vpop.f32.mrb[25].mxu0 }
 0x78b   :  { %v2719_v47 = vpop.f32.mrb[26].mxu0 }
 0x78c   :  { %3053 = vxpose.xlu1.b32.start.end [1/1] (short) (narrow) %v2719_v47, 32  ;;  %v5150_v48 = vpop.f32.mrb[27].mxu0 }
 0x79c   :  { %v2909_v53 = vpop.trf.xlu0 }
 0x7a0   :  { %v2910_v18 = vpop.trf.xlu0 }
 0x7a4   :  { %v2911_v60 = vpop.trf.xlu0 }
 0x7a7   :  { %v2941_v21 = vpop.trf.xlu1 }
 0x7a8   :  { %v6599_v35 = vpop.trf.xlu0 }
 0x7ab   :  { %v2942_v39 = vpop.trf.xlu1 }
 0x7ac   :  { %v2889_v41 = vpop.f32.mrb[28].mxu0 }
 0x7ad   :  { %3117 = vxpose.xlu1.b32.start.end [1/1] (short) (narrow) %v2889_v41, 32  ;;  %v5172_v59 = vpop.f32.mrb[29].mxu0 }
 0x7af   :  { %v6601_v62 = vpop.trf.xlu1 }
 0x7b3   :  { %v6603_v36 = vpop.trf.xlu1 }
 0x7b6   :  { %v2634_v63 = vpop.f32.mrb[30].mxu1 }
 0x7b7   :  { %3021 = vxpose.xlu0.b32.start.end [1/1] (short) (narrow) %v2634_v63, 32  ;;  %v5139_v31 = vpop.f32.mrb[31].mxu1 }
 0x7bb   :  { %v2973_v51 = vpop.trf.xlu0 }
 0x7bc   :  { %v3149_v22 = vcombine.low %v2909_v53, %v2973_v51  ;;  %v3150_v37 = vcombine.high %v2909_v53, %v2973_v51 }
 0x7be   :  { %v3157_v61 = vrot.slane %v3149_v22, %v6606_v25  ;;  %v3164_v57 = vrot.slane %v3150_v37, %v6606_v25 }
 0x7bf   :  { %v2974_v26 = vpop.trf.xlu0 }
 0x7c0   :  { %v3285_v16 = vcombine.low %v2910_v18, %v2974_v26  ;;  %v3286_v54 = vcombine.high %v2910_v18, %v2974_v26 }
 0x7c2   :  { %v3293_v7 = vrot.slane %v3285_v16, %v6606_v25  ;;  %v3300_v27 = vrot.slane %v3286_v54, %v6606_v25 }
 0x7c3   :  { %v3005_v38 = vpop.trf.xlu1  ;;  %v2975_v13 = vpop.trf.xlu0 }
 0x7c4   :  { %v3165_v10 = vcombine.low %v2941_v21, %v3005_v38  ;;  %v3166_v9 = vcombine.high %v2941_v21, %v3005_v38  ;;  %v3421_v58 = vcombine.low %v2911_v60, %v2975_v13  ;;  %v3422_v3 = vcombine.high %v2911_v60, %v2975_v13 }
 0x7c6   :  { %v3173_v5 = vrot.slane %v3165_v10, %v6606_v25  ;;  %v3180_v55 = vrot.slane %v3166_v9, %v6606_v25  ;;  %v2804_v40 = vpop.f32.mrb[32].mxu1  ;;  %v3429_v33 = vrot.slane %v3421_v58, %v6606_v25  ;;  %v3436_v15 = vrot.slane %v3422_v3, %v6606_v25 }
 0x7c7   :  { %3085 = vxpose.xlu0.b32.start.end [1/1] (short) (narrow) %v2804_v40, 32  ;;  %v3006_v56 = vpop.trf.xlu1  ;;  %v5161_v28 = vpop.f32.mrb[33].mxu1 }
 0x7c8   :  { %v3213_v1 = vcombine.low %v3157_v61, %v3173_v5  ;;  %v3214_v52 = vcombine.high %v3157_v61, %v3173_v5  ;;  %v3229_v0 = vcombine.low %v3164_v57, %v3180_v55  ;;  %v3230_v17 = vcombine.high %v3164_v57, %v3180_v55  ;;  %v2976_v2 = vpop.trf.xlu0 }
 0x7c9   :  { %v3301_v29 = vcombine.low %v2942_v39, %v3006_v56  ;;  %v3302_v8 = vcombine.high %v2942_v39, %v3006_v56  ;;  %v3557_v4 = vcombine.low %v6599_v35, %v2976_v2  ;;  %v3558_v49 = vcombine.high %v6599_v35, %v2976_v2 }
 0x7ca   :  { %v3221_v14 = vrot.slane %v3213_v1, %v6611_v30  ;;  %v3228_v19 = vrot.slane %v3214_v52, %v6611_v30  ;;  %v3237_v32 = vrot.slane %v3229_v0, %v6611_v30  ;;  %v3244_v44 = vrot.slane %v3230_v17, %v6611_v30 }
 0x7cb   :  { %v3309_v20 = vrot.slane %v3301_v29, %v6606_v25  ;;  %v3316_v43 = vrot.slane %v3302_v8, %v6606_v25  ;;  %v3007_v59 = vpop.trf.xlu1  ;;  %v3565_v38 = vrot.slane %v3557_v4, %v6606_v25  ;;  %v3572_v58 = vrot.slane %v3558_v49, %v6606_v25 }
 0x7cc   :  { %v4845_v23 = vcombine.low %v3221_v14, %v3228_v19  ;;  %v4847_v42 = vcombine.high %v3221_v14, %v3228_v19  ;;  %v4849_v47 = vcombine.low %v3237_v32, %v3244_v44  ;;  %v4851_v48 = vcombine.high %v3237_v32, %v3244_v44 }
 0x7cd   :  { %v3349_v53 = vcombine.low %v3293_v7, %v3309_v20  ;;  %v3350_v18 = vcombine.high %v3293_v7, %v3309_v20  ;;  %v3365_v21 = vcombine.low %v3300_v27, %v3316_v43  ;;  %v3366_v41 = vcombine.high %v3300_v27, %v3316_v43 }
 0x7ce   :  { %v6628_v60 = vrot.slane %v4845_v23, %v6606_v25  ;;  %v6631_v39 = vrot.slane %v4847_v42, %v6606_v25  ;;  %v6634_v63 = vrot.slane %v4849_v47, %v6606_v25  ;;  %v6637_v35 = vrot.slane %v4851_v48, %v6606_v25 }
 0x7cf   :  { %v3357_v31 = vrot.slane %v3349_v53, %v6611_v30  ;;  %v3364_v12 = vrot.slane %v3350_v18, %v6611_v30  ;;  %v3373_v34 = vrot.slane %v3365_v21, %v6611_v30  ;;  %v3380_v51 = vrot.slane %v3366_v41, %v6611_v30 }
 0x7d0   :  { %v3437_v11 = vcombine.low %v6601_v62, %v3007_v59  ;;  %v3438_v50 = vcombine.high %v6601_v62, %v3007_v59  ;;  %v3758_v46 = vcombine.high %v6628_v60, %v6631_v39  ;;  %v3790_v26 = vcombine.high %v6634_v63, %v6637_v35  ;;  %v3008_v62 = vpop.trf.xlu1 }
 0x7d1   :  { %v4853_v22 = vcombine.low %v3357_v31, %v3364_v12  ;;  %v4855_v37 = vcombine.high %v3357_v31, %v3364_v12  ;;  %v4857_v6 = vcombine.low %v3373_v34, %v3380_v51  ;;  %v4859_v57 = vcombine.high %v3373_v34, %v3380_v51 }
 0x7d2   :  { %v3445_v16 = vrot.slane %v3437_v11, %v6606_v25  ;;  %v3452_v54 = vrot.slane %v3438_v50, %v6606_v25  ;;  %v3772_v13 = vrot.slane %v3758_v46, %v6611_v30  ;;  %v3804_v10 = vrot.slane %v3790_v26, %v6611_v30 }
 0x7d3   :  { %v6655_v9 = vrot.slane %v4853_v22, %v6606_v25  ;;  %v6658_v61 = vrot.slane %v4855_v37, %v6606_v25  ;;  %v6662_v56 = vrot.slane %v4857_v6, %v6606_v25  ;;  %v3573_v27 = vcombine.low %v6603_v36, %v3008_v62 }
 0x7d4   :  { %v3485_v3 = vcombine.low %v3429_v33, %v3445_v16  ;;  %v3486_v5 = vcombine.high %v3429_v33, %v3445_v16  ;;  %v3501_v55 = vcombine.low %v3436_v15, %v3452_v54  ;;  %v3502_v40 = vcombine.high %v3436_v15, %v3452_v54 }
 0x7d5   :  { %v3823_v7 = vcombine.low %v3772_v13, %v3804_v10  ;;  %v3574_v28 = vcombine.high %v6603_v36, %v3008_v62  ;;  %v6671_v2 = vrot.slane %v4859_v57, %v6606_v25  ;;  %v3824_v29 = vcombine.high %v3772_v13, %v3804_v10 }
 0x7d6   :  { %v3493_v1 = vrot.slane %v3485_v3, %v6611_v30  ;;  %v3500_v52 = vrot.slane %v3486_v5, %v6611_v30  ;;  %v3509_v0 = vrot.slane %v3501_v55, %v6611_v30  ;;  %v3516_v17 = vrot.slane %v3502_v40, %v6611_v30 }
 0x7d7   :  { %4257 = vrot.lane.b32.xlu1 %v3823_v7, %s5556_s1  ;;  %v3581_v8 = vrot.slane %v3573_v27, %v6606_v25  ;;  %v3588_v33 = vrot.slane %v3574_v28, %v6606_v25  ;;  %v3757_v13 = vcombine.low %v6628_v60, %v6631_v39  ;;  %v3789_v10 = vcombine.low %v6634_v63, %v6637_v35 }
 0x7d8   :  { %v4861_v36 = vcombine.low %v3493_v1, %v3500_v52  ;;  %v4863_v15 = vcombine.high %v3493_v1, %v3500_v52  ;;  %v4865_v14 = vcombine.low %v3509_v0, %v3516_v17  ;;  %v4867_v19 = vcombine.high %v3509_v0, %v3516_v17 }
 0x7d9   :  { %v3621_v32 = vcombine.low %v3565_v38, %v3581_v8  ;;  %v3622_v44 = vcombine.high %v3565_v38, %v3581_v8  ;;  %v3637_v20 = vcombine.low %v3572_v58, %v3588_v33  ;;  %v3638_v43 = vcombine.high %v3572_v58, %v3588_v33 }
 0x7da   :  { %v3973_v4 = vrot.slane %v4861_v36, %v6606_v25  ;;  %v3989_v49 = vrot.slane %v4863_v15, %v6606_v25  ;;  %v4005_v23 = vrot.slane %v4865_v14, %v6606_v25  ;;  %v4021_v42 = vrot.slane %v4867_v19, %v6606_v25 }
 0x7db   :  { %4273 = vrot.lane.b32.xlu1 %v3824_v29, %s5557_s23  ;;  %v3629_v47 = vrot.slane %v3621_v32, %v6611_v30  ;;  %v3636_v48 = vrot.slane %v3622_v44, %v6611_v30  ;;  %v3645_v53 = vrot.slane %v3637_v20, %v6611_v30  ;;  %v3652_v18 = vrot.slane %v3638_v43, %v6611_v30  ;;  %v4382_v32 = vld [vmem:[%s7111_s4 + $0x8] sm:$0xff]  ;;  %v4384_v44 = vld [vmem:[%s7111_s4 + $0x18] sm:$0xff]  ;;  %v4381_v20 = vld [vmem:[%s7111_s4] sm:$0xff] }
 0x7dc   :  { %v4029_v21 = vcombine.low %v3973_v4, %v3989_v49  ;;  %v4061_v41 = vcombine.low %v4005_v23, %v4021_v42  ;;  %v4030_v59 = vcombine.high %v3973_v4, %v3989_v49  ;;  %v4062_v31 = vcombine.high %v4005_v23, %v4021_v42  ;;  %v4383_v49 = vld [vmem:[%s7111_s4 + $0x10] sm:$0xff] }
 0x7dd   :  { %v4869_v12 = vcombine.low %v3629_v47, %v3636_v48  ;;  %v4871_v34 = vcombine.high %v3629_v47, %v3636_v48  ;;  %v4873_v51 = vcombine.low %v3645_v53, %v3652_v18  ;;  %v4875_v11 = vcombine.high %v3645_v53, %v3652_v18 }
 0x7de   :  { %v6686_v50 = vrot.slane %v4029_v21, %v6611_v30  ;;  %v6689_v46 = vrot.slane %v4061_v41, %v6611_v30  ;;  %v4044_v26 = vrot.slane %v4030_v59, %v6611_v30  ;;  %v4076_v22 = vrot.slane %v4062_v31, %v6611_v30 }
 0x7df   :  { %v4109_v37 = vrot.slane %v4869_v12, %v6606_v25  ;;  %v4125_v6 = vrot.slane %v4871_v34, %v6606_v25  ;;  %v4141_v38 = vrot.slane %v4873_v51, %v6606_v25  ;;  %v4157_v16 = vrot.slane %v4875_v11, %v6606_v25 }
 0x7e0   :  { %v4094_v54 = vcombine.high %v6686_v50, %v6689_v46  ;;  %v3893_v62 = vcombine.low %v6655_v9, %v6658_v61  ;;  %v3925_v57 = vcombine.low %v6662_v56, %v6671_v2  ;;  %v4095_v58 = vcombine.low %v4044_v26, %v4076_v22 }
 0x7e1   :  { %v4165_v3 = vcombine.low %v4109_v37, %v4125_v6  ;;  %v4197_v5 = vcombine.low %v4141_v38, %v4157_v16  ;;  %v6709_v55 = vrot.slane %v3757_v13, %v6611_v30  ;;  %v6712_v60 = vrot.slane %v3789_v10, %v6611_v30 }
 0x7e2   :  { %4245 = vrot.lane.b32.xlu1 %v4094_v54, %s5558_s0  ;;  %v6715_v39 = vrot.slane %v3893_v62, %v6611_v30  ;;  %v6718_v63 = vrot.slane %v3925_v57, %v6611_v30  ;;  %v4093_v7 = vcombine.low %v6686_v50, %v6689_v46  ;;  %v4096_v27 = vcombine.high %v4044_v26, %v4076_v22 }
 0x7e3   :  { %v6721_v35 = vrot.slane %v4165_v3, %v6611_v30  ;;  %v6724_v40 = vrot.slane %v4197_v5, %v6611_v30  ;;  %v3821_v28 = vcombine.low %v6709_v55, %v6712_v60  ;;  %v3822_v0 = vcombine.high %v6709_v55, %v6712_v60 }
 0x7e4   :  { %v3957_v1 = vcombine.low %v6715_v39, %v6718_v63  ;;  %v3894_v17 = vcombine.high %v6655_v9, %v6658_v61  ;;  %v3926_v29 = vcombine.high %v6662_v56, %v6671_v2  ;;  %v3958_v8 = vcombine.high %v6715_v39, %v6718_v63 }
 0x7e5   :  { %v4229_v52 = vcombine.low %v6721_v35, %v6724_v40  ;;  %v4166_v19 = vcombine.high %v4109_v37, %v4125_v6  ;;  %v4198_v9 = vcombine.high %v4141_v38, %v4157_v16  ;;  %v4230_v61 = vcombine.high %v6721_v35, %v6724_v40 }
 0x7e6   :  { %4261 = vrot.lane.b32.xlu1 %v4095_v58, %s5556_s1  ;;  %v3908_v33 = vrot.slane %v3894_v17, %v6611_v30  ;;  %v3940_v36 = vrot.slane %v3926_v29, %v6611_v30  ;;  %v5279_v4 = vpack.c.bf16 %v4384_v44, %v4382_v32  ;;  %v5281_v23 = vpack.c.bf16 %v4383_v49, %v4381_v20 }
 0x7e7   :  { %v4180_v56 = vrot.slane %v4166_v19, %v6611_v30  ;;  %v4212_v2 = vrot.slane %v4198_v9, %v6611_v30 }
 0x7e8   :  { %v3959_v15 = vcombine.low %v3908_v33, %v3940_v36  ;;  %v3960_v14 = vcombine.high %v3908_v33, %v3940_v36  ;;  %5280 = vmatprep.subr.bf16.mxu1 %v5279_v4 }
 0x7e9   :  { %v4231_v43 = vcombine.low %v4180_v56, %v4212_v2  ;;  %5282 = vmatpush1.bf16.msra.mxu1 %v5281_v23  ;;  %v4232_v42 = vcombine.high %v4180_v56, %v4212_v2 }
 0x7ea   :  { %4277 = vrot.lane.b32.xlu1 %v4096_v27, %s5557_s23 }
 0x7fc   :  { %4241 = vrot.lane.b32.xlu0 %v3822_v0, %s5558_s0 }
 0x800   :  { %4243 = vrot.lane.b32.xlu0 %v3958_v8, %s5558_s0 }
 0x804   :  { %4259 = vrot.lane.b32.xlu0 %v3959_v15, %s5556_s1 }
 0x808   :  { %4275 = vrot.lane.b32.xlu0 %v3960_v14, %s5557_s23 }
 0x80c   :  { %4247 = vrot.lane.b32.xlu0 %v4230_v61, %s5558_s0  ;;  %v3069_v47 = vpop.trf.xlu1 }
 0x810   :  { %4263 = vrot.lane.b32.xlu0 %v4231_v43, %s5556_s1  ;;  %v3070_v48 = vpop.trf.xlu1 }
 0x814   :  { %4279 = vrot.lane.b32.xlu0 %v4232_v42, %s5557_s23  ;;  %v3071_v53 = vpop.trf.xlu1 }
 0x818   :  { %v6769_v18 = vpop.trf.xlu1 }
 0x82d   :  { %v3133_v59 = vpop.trf.xlu1 }
 0x82e   :  { %v3197_v51 = vcombine.low %v3069_v47, %v3133_v59  ;;  %v3198_v26 = vcombine.high %v3069_v47, %v3133_v59 }
 0x830   :  { %v3205_v38 = vrot.slane %v3197_v51, %v6606_v25  ;;  %v3212_v57 = vrot.slane %v3198_v26, %v6606_v25 }
 0x831   :  { %v3134_v12 = vpop.trf.xlu1 }
 0x832   :  { %v3333_v13 = vcombine.low %v3070_v48, %v3134_v12  ;;  %v3334_v10 = vcombine.high %v3070_v48, %v3134_v12 }
 0x834   :  { %v3341_v8 = vrot.slane %v3333_v13, %v6606_v25  ;;  %v3348_v33 = vrot.slane %v3334_v10, %v6606_v25 }
 0x835   :  { %v3135_v6 = vpop.trf.xlu1 }
 0x836   :  { %v3469_v0 = vcombine.low %v3071_v53, %v3135_v6  ;;  %v3470_v9 = vcombine.high %v3071_v53, %v3135_v6 }
 0x837   :  { %v3037_v21 = vpop.trf.xlu0 }
 0x838   :  { %v3477_v43 = vrot.slane %v3469_v0, %v6606_v25 }
 0x839   :  { %v3136_v36 = vpop.trf.xlu1 }
 0x83a   :  { %v3605_v4 = vcombine.low %v6769_v18, %v3136_v36  ;;  %v3606_v42 = vcombine.high %v6769_v18, %v3136_v36 }
 0x83b   :  { %v3038_v41 = vpop.trf.xlu0 }
 0x83c   :  { %v3620_v13 = vrot.slane %v3606_v42, %v6606_v25 }
 0x83f   :  { %v3039_v31 = vpop.trf.xlu0 }
 0x843   :  { %v6771_v34 = vpop.trf.xlu0 }
 0x847   :  { %v3101_v11 = vpop.trf.xlu0 }
 0x848   :  { %v3181_v22 = vcombine.low %v3037_v21, %v3101_v11  ;;  %v3182_v37 = vcombine.high %v3037_v21, %v3101_v11  ;;  %v3484_v11 = vrot.slane %v3470_v9, %v6606_v25 }
 0x84a   :  { %v3189_v16 = vrot.slane %v3181_v22, %v6606_v25  ;;  %v3196_v54 = vrot.slane %v3182_v37, %v6606_v25 }
 0x84b   :  { %v3102_v62 = vpop.trf.xlu0 }
 0x84c   :  { %v3245_v58 = vcombine.low %v3189_v16, %v3205_v38  ;;  %v3246_v3 = vcombine.high %v3189_v16, %v3205_v38  ;;  %v3317_v5 = vcombine.low %v3038_v41, %v3102_v62  ;;  %v3318_v27 = vcombine.high %v3038_v41, %v3102_v62 }
 0x84d   :  { %v3261_v17 = vcombine.low %v3196_v54, %v3212_v57  ;;  %v3262_v29 = vcombine.high %v3196_v54, %v3212_v57  ;;  %v3613_v54 = vrot.slane %v3605_v4, %v6606_v25 }
 0x84e   :  { %v3325_v15 = vrot.slane %v3317_v5, %v6606_v25  ;;  %v3332_v14 = vrot.slane %v3318_v27, %v6606_v25  ;;  %v3253_v61 = vrot.slane %v3245_v58, %v6611_v30  ;;  %v3260_v56 = vrot.slane %v3246_v3, %v6611_v30 }
 0x84f   :  { %v3103_v19 = vpop.trf.xlu0  ;;  %v3269_v49 = vrot.slane %v3261_v17, %v6611_v30  ;;  %v3276_v23 = vrot.slane %v3262_v29, %v6611_v30 }
 0x850   :  { %v3381_v2 = vcombine.low %v3325_v15, %v3341_v8  ;;  %v3382_v32 = vcombine.high %v3325_v15, %v3341_v8  ;;  %v3397_v44 = vcombine.low %v3332_v14, %v3348_v33  ;;  %v3398_v20 = vcombine.high %v3332_v14, %v3348_v33 }
 0x851   :  { %v3453_v59 = vcombine.low %v3039_v31, %v3103_v19  ;;  %v3454_v12 = vcombine.high %v3039_v31, %v3103_v19  ;;  %v4846_v26 = vcombine.low %v3253_v61, %v3260_v56  ;;  %v4848_v22 = vcombine.high %v3253_v61, %v3260_v56 }
 0x852   :  { %v3389_v47 = vrot.slane %v3381_v2, %v6611_v30  ;;  %v3396_v48 = vrot.slane %v3382_v32, %v6611_v30  ;;  %v3405_v53 = vrot.slane %v3397_v44, %v6611_v30  ;;  %v3412_v41 = vrot.slane %v3398_v20, %v6611_v30 }
 0x853   :  { %v3104_v21 = vpop.trf.xlu0  ;;  %v4850_v18 = vcombine.low %v3269_v49, %v3276_v23  ;;  %v4852_v6 = vcombine.high %v3269_v49, %v3276_v23  ;;  %v3461_v38 = vrot.slane %v3453_v59, %v6606_v25  ;;  %v3468_v16 = vrot.slane %v3454_v12, %v6606_v25 }
 0x854   :  { %v3589_v51 = vcombine.low %v6771_v34, %v3104_v21  ;;  %v3590_v37 = vcombine.high %v6771_v34, %v3104_v21  ;;  %v4854_v10 = vcombine.low %v3389_v47, %v3396_v48  ;;  %v4856_v62 = vcombine.high %v3389_v47, %v3396_v48 }
 0x855   :  { %v4858_v57 = vcombine.low %v3405_v53, %v3412_v41  ;;  %v4860_v58 = vcombine.high %v3405_v53, %v3412_v41  ;;  %v3517_v3 = vcombine.low %v3461_v38, %v3477_v43  ;;  %v3518_v5 = vcombine.high %v3461_v38, %v3477_v43 }
 0x856   :  { %v3597_v31 = vrot.slane %v3589_v51, %v6606_v25  ;;  %v3533_v27 = vcombine.low %v3468_v16, %v3484_v11  ;;  %v3534_v34 = vcombine.high %v3468_v16, %v3484_v11  ;;  %v3604_v0 = vrot.slane %v3590_v37, %v6606_v25 }
 0x857   :  { %v3708_v17 = vrot.slane %v4846_v26, %v6606_v25  ;;  %v3724_v29 = vrot.slane %v4848_v22, %v6606_v25  ;;  %v3740_v8 = vrot.slane %v4850_v18, %v6606_v25  ;;  %v3756_v33 = vrot.slane %v4852_v6, %v6606_v25 }
 0x858   :  { %v3653_v36 = vcombine.low %v3597_v31, %v3613_v54  ;;  %v3654_v15 = vcombine.high %v3597_v31, %v3613_v54  ;;  %v3669_v14 = vcombine.low %v3604_v0, %v3620_v13  ;;  %v3670_v19 = vcombine.high %v3604_v0, %v3620_v13 }
 0x859   :  { %v3844_v9 = vrot.slane %v4854_v10, %v6606_v25  ;;  %v3860_v61 = vrot.slane %v4856_v62, %v6606_v25  ;;  %v3876_v56 = vrot.slane %v4858_v57, %v6606_v25  ;;  %v3892_v2 = vrot.slane %v4860_v58, %v6606_v25 }
 0x85a   :  { %v3525_v32 = vrot.slane %v3517_v3, %v6611_v30  ;;  %v3532_v44 = vrot.slane %v3518_v5, %v6611_v30  ;;  %v3541_v20 = vrot.slane %v3533_v27, %v6611_v30  ;;  %v3548_v43 = vrot.slane %v3534_v34, %v6611_v30  ;;  %v4386_v27 = vld [vmem:[%s7111_s4 + $0x28] sm:$0xff]  ;;  %v4388_v34 = vld [vmem:[%s7111_s4 + $0x38] sm:$0xff] }
 0x85b   :  { %v3661_v4 = vrot.slane %v3653_v36, %v6611_v30  ;;  %v3668_v49 = vrot.slane %v3654_v15, %v6611_v30  ;;  %v3677_v23 = vrot.slane %v3669_v14, %v6611_v30  ;;  %v3684_v42 = vrot.slane %v3670_v19, %v6611_v30 }
 0x85c   :  { %v3773_v47 = vcombine.low %v3708_v17, %v3724_v29  ;;  %v3805_v48 = vcombine.low %v3740_v8, %v3756_v33  ;;  %v3909_v53 = vcombine.low %v3844_v9, %v3860_v61  ;;  %v4862_v21 = vcombine.low %v3525_v32, %v3532_v44 }
 0x85d   :  { %v4864_v41 = vcombine.high %v3525_v32, %v3532_v44  ;;  %v4866_v59 = vcombine.low %v3541_v20, %v3548_v43  ;;  %v3941_v12 = vcombine.low %v3876_v56, %v3892_v2  ;;  %v4868_v51 = vcombine.high %v3541_v20, %v3548_v43  ;;  %v4387_v32 = vld [vmem:[%s7111_s4 + $0x30] sm:$0xff]  ;;  %v4392_v44 = vld [vmem:[%s7111_s4 + $0x58] sm:$0xff]  ;;  %v4389_v20 = vld [vmem:[%s7111_s4 + $0x40] sm:$0xff] }
 0x85e   :  { %v3781_v11 = vrot.slane %v3773_v47, %v6611_v30  ;;  %v3813_v26 = vrot.slane %v3805_v48, %v6611_v30  ;;  %v3917_v22 = vrot.slane %v3909_v53, %v6611_v30  ;;  %v4870_v37 = vcombine.low %v3661_v4, %v3668_v49  ;;  %v4391_v43 = vld [vmem:[%s7111_s4 + $0x50] sm:$0xff]  ;;  %v4394_v47 = vld [vmem:[%s7111_s4 + $0x68] sm:$0xff]  ;;  %v4396_v48 = vld [vmem:[%s7111_s4 + $0x78] sm:$0xff] }
 0x85f   :  { %v4872_v18 = vcombine.high %v3661_v4, %v3668_v49  ;;  %v4874_v6 = vcombine.low %v3677_v23, %v3684_v42  ;;  %v3949_v38 = vrot.slane %v3941_v12, %v6611_v30  ;;  %v4876_v16 = vcombine.high %v3677_v23, %v3684_v42 }
 0x860   :  { %v3825_v54 = vcombine.low %v3781_v11, %v3813_v26  ;;  %v3774_v13 = vcombine.high %v3708_v17, %v3724_v29  ;;  %v3806_v10 = vcombine.high %v3740_v8, %v3756_v33  ;;  %v3910_v62 = vcombine.high %v3844_v9, %v3860_v61 }
 0x861   :  { %v3961_v31 = vcombine.low %v3917_v22, %v3949_v38  ;;  %v3942_v57 = vcombine.high %v3876_v56, %v3892_v2  ;;  %v6822_v58 = vrot.slane %v4862_v21, %v6606_v25  ;;  %v6825_v3 = vrot.slane %v4864_v41, %v6606_v25  ;;  %v4385_v2 = vld [vmem:[%s7111_s4 + $0x20] sm:$0xff] }
 0x862   :  { %v6828_v5 = vrot.slane %v4866_v59, %v6606_v25  ;;  %4289 = vrot.lane.b32.xlu1 %v3825_v54, %s5559_s9  ;;  %v6838_v0 = vrot.slane %v4868_v51, %v6606_v25  ;;  %v4116_v17 = vrot.slane %v4870_v37, %v6606_v25  ;;  %v4132_v29 = vrot.slane %v4872_v18, %v6606_v25 }
 0x863   :  { %v4148_v8 = vrot.slane %v4874_v6, %v6606_v25  ;;  %4291 = vrot.lane.b32.xlu0 %v3961_v31, %s5559_s9  ;;  %v4164_v33 = vrot.slane %v4876_v16, %v6606_v25  ;;  %v3826_v36 = vcombine.high %v3781_v11, %v3813_v26  ;;  %v3788_v15 = vrot.slane %v3774_v13, %v6611_v30  ;;  %v4390_v25 = vld [vmem:[%s7111_s4 + $0x48] sm:$0xff]  ;;  %v4393_v11 = vld [vmem:[%s7111_s4 + $0x60] sm:$0xff]  ;;  %v4395_v26 = vld [vmem:[%s7111_s4 + $0x70] sm:$0xff] }
 0x864   :  { %v3820_v14 = vrot.slane %v3806_v10, %v6611_v30  ;;  %v3962_v19 = vcombine.high %v3917_v22, %v3949_v38  ;;  %v3924_v9 = vrot.slane %v3910_v62, %v6611_v30  ;;  %v3956_v61 = vrot.slane %v3942_v57, %v6611_v30 }
 0x865   :  { %v5283_v56 = vpack.c.bf16 %v4388_v34, %v4386_v27  ;;  %v4045_v49 = vcombine.low %v6822_v58, %v6825_v3  ;;  %v4077_v23 = vcombine.low %v6828_v5, %v6838_v0  ;;  %v5285_v42 = vpack.c.bf16 %v4387_v32, %v4385_v2  ;;  %v4516_v2 = vld [vmem:[%s7112_s5 + $0x10] sm:$0xff]  ;;  %v4517_v32 = vld [vmem:[%s7112_s5 + $0x18] sm:$0xff] }
 0x866   :  { %4305 = vrot.lane.b32.xlu1 %v3826_v36, %s5560_s17  ;;  %v3827_v4 = vcombine.low %v3788_v15, %v3820_v14  ;;  %v3963_v53 = vcombine.low %v3924_v9, %v3956_v61  ;;  %v4181_v21 = vcombine.low %v4116_v17, %v4132_v29  ;;  %v4213_v41 = vcombine.low %v4148_v8, %v4164_v33 }
 0x867   :  { %4307 = vrot.lane.b32.xlu0 %v3962_v19, %s5560_s17  ;;  %5284 = vmatprep.subr.bf16.mxu1 %v5283_v56  ;;  %v5287_v59 = vpack.c.bf16 %v4392_v44, %v4390_v25  ;;  %v5289_v12 = vpack.c.bf16 %v4391_v43, %v4389_v20  ;;  %v5291_v51 = vpack.c.bf16 %v4396_v48, %v4394_v47  ;;  %v4532_v19 = vld [vmem:[%s7112_s5 + $0x90] sm:$0xff]  ;;  %v4534_v25 = vld [vmem:[%s7112_s5 + $0xa0] sm:$0xff]  ;;  %v4535_v44 = vld [vmem:[%s7112_s5 + $0xa8] sm:$0xff] }
 0x868   :  { %5286 = vmatpush1.bf16.msra.mxu1 %v5285_v42  ;;  %v3828_v22 = vcombine.high %v3788_v15, %v3820_v14  ;;  %v3964_v37 = vcombine.high %v3924_v9, %v3956_v61  ;;  %v4053_v18 = vrot.slane %v4045_v49, %v6611_v30  ;;  %v4085_v6 = vrot.slane %v4077_v23, %v6611_v30  ;;  %v4515_v14 = vld [vmem:[%s7112_s5 + $0x8] sm:$0xff]  ;;  %v4533_v9 = vld [vmem:[%s7112_s5 + $0x98] sm:$0xff]  ;;  %v4518_v49 = vld [vmem:[%s7112_s5 + $0x20] sm:$0xff] }
 0x869   :  { %5288 = vmatprep.subr.bf16.mxu1 %v5287_v59  ;;  %v4189_v38 = vrot.slane %v4181_v21, %v6611_v30  ;;  %v4221_v16 = vrot.slane %v4213_v41, %v6611_v30  ;;  %v4182_v54 = vcombine.high %v4116_v17, %v4132_v29  ;;  %v4214_v13 = vcombine.high %v4148_v8, %v4164_v33  ;;  %v4519_v23 = vld [vmem:[%s7112_s5 + $0x28] sm:$0xff]  ;;  %v4536_v42 = vld [vmem:[%s7112_s5 + $0xb0] sm:$0xff]  ;;  %v4537_v47 = vld [vmem:[%s7112_s5 + $0xb8] sm:$0xff] }
 0x86a   :  { %4321 = vrot.lane.b32.xlu1 %v3827_v4, %s5561_s28  ;;  %v5293_v10 = vpack.c.bf16 %v4395_v26, %v4393_v11  ;;  %v4097_v31 = vcombine.low %v4053_v18, %v4085_v6  ;;  %v4046_v62 = vcombine.high %v6822_v58, %v6825_v3  ;;  %v4078_v57 = vcombine.high %v6828_v5, %v6838_v0  ;;  %v4530_v3 = vld [vmem:[%s7112_s5 + $0x80] sm:$0xff]  ;;  %v4531_v5 = vld [vmem:[%s7112_s5 + $0x88] sm:$0xff]  ;;  %v4520_v41 = vld [vmem:[%s7112_s5 + $0x30] sm:$0xff] }
 0x86b   :  { %4323 = vrot.lane.b32.xlu0 %v3963_v53, %s5561_s28  ;;  %v4233_v27 = vcombine.low %v4189_v38, %v4221_v16  ;;  %v4196_v34 = vrot.slane %v4182_v54, %v6611_v30  ;;  %v4228_v17 = vrot.slane %v4214_v13, %v6611_v30  ;;  %v4098_v29 = vcombine.high %v4053_v18, %v4085_v6  ;;  %v4521_v59 = vld [vmem:[%s7112_s5 + $0x38] sm:$0xff]  ;;  %v4540_v18 = vld [vmem:[%s7112_s5 + $0xd0] sm:$0xff] }
 0x86c   :  { %5290 = vmatpush1.bf16.msra.mxu1 %v5289_v12  ;;  %v4060_v8 = vrot.slane %v4046_v62, %v6611_v30  ;;  %v4092_v33 = vrot.slane %v4078_v57, %v6611_v30  ;;  %v4514_v30 = vld [vmem:[%s7112_s5] sm:$0xff]  ;;  %v5295_v15 = vpack.c.bf16 %v4531_v5, %v4530_v3  ;;  %v5299_v56 = vpack.c.bf16 %v4533_v9, %v4532_v19  ;;  %v4541_v6 = vld [vmem:[%s7112_s5 + $0xd8] sm:$0xff]  ;;  %v4524_v54 = vld [vmem:[%s7112_s5 + $0x50] sm:$0xff] }
 0x86d   :  { %5292 = vmatprep.subr.bf16.mxu1 %v5291_v51  ;;  %v4235_v36 = vcombine.low %v4196_v34, %v4228_v17  ;;  %v5297_v61 = vpack.c.bf16 %v4515_v14, %v4514_v30  ;;  %v5301_v20 = vpack.c.bf16 %v4517_v32, %v4516_v2  ;;  %v4234_v43 = vcombine.high %v4189_v38, %v4221_v16  ;;  %v4538_v12 = vld [vmem:[%s7112_s5 + $0xc0] sm:$0xff]  ;;  %v4539_v51 = vld [vmem:[%s7112_s5 + $0xc8] sm:$0xff]  ;;  %v4525_v13 = vld [vmem:[%s7112_s5 + $0x58] sm:$0xff] }
 0x86e   :  { %4337 = vrot.lane.b32.xlu1 %v3828_v22, %s5562_s11  ;;  %v4099_v58 = vcombine.low %v4060_v8, %v4092_v33  ;;  %v4100_v0 = vcombine.high %v4060_v8, %v4092_v33  ;;  %5296 = vmatprep.subr.bf16.mxu0 %v5295_v15  ;;  %v5303_v4 = vpack.c.bf16 %v4535_v44, %v4534_v25  ;;  %v4522_v22 = vld [vmem:[%s7112_s5 + $0x40] sm:$0xff] }
 0x86f   :  { %4339 = vrot.lane.b32.xlu0 %v3964_v37, %s5562_s11  ;;  %5298 = vmatpush3.bf16.msra.mxu0 %v5297_v61  ;;  %v5305_v48 = vpack.c.bf16 %v4519_v23, %v4518_v49  ;;  %v4236_v53 = vcombine.high %v4196_v34, %v4228_v17  ;;  %v5307_v21 = vpack.c.bf16 %v4537_v47, %v4536_v42  ;;  %v4523_v37 = vld [vmem:[%s7112_s5 + $0x48] sm:$0xff]  ;;  %v4258_v17 = vpop.permute.xlu1 %4257 }
 0x870   :  { %5294 = vmatpush1.bf16.msra.mxu1 %v5293_v10  ;;  %5300 = vmatprep.subr.bf16.mxu0 %v5299_v56  ;;  %v5309_v11 = vpack.c.bf16 %v4521_v59, %v4520_v41  ;;  %v5311_v26 = vpack.c.bf16 %v4539_v51, %v4538_v12  ;;  %v5313_v38 = vpack.c.bf16 %v4523_v37, %v4522_v22  ;;  %v4542_v10 = vld [vmem:[%s7112_s5 + $0xe0] sm:$0xff] }
 0x871   :  { %v5315_v16 = vpack.c.bf16 %v4541_v6, %v4540_v18  ;;  %v5317_v62 = vpack.c.bf16 %v4525_v13, %v4524_v54  ;;  %v4526_v54 = vld [vmem:[%s7112_s5 + $0x60] sm:$0xff] }
 0x872   :  { %4293 = vrot.lane.b32.xlu1 %v4097_v31, %s5559_s9  ;;  %v4543_v31 = vld [vmem:[%s7112_s5 + $0xe8] sm:$0xff] }
 0x873   :  { %4295 = vrot.lane.b32.xlu0 %v4233_v27, %s5559_s9  ;;  %5302 = vmatpush3.bf16.msra.mxu0 %v5301_v20  ;;  %v5319_v57 = vpack.c.bf16 %v4543_v31, %v4542_v10  ;;  %v4242_v27 = vpop.permute.xlu0 %4241  ;;  %v4274_v8 = vpop.permute.xlu1 %4273  ;;  %v4544_v10 = vld [vmem:[%s7112_s5 + $0xf0] sm:$0xff]  ;;  %v4545_v31 = vld [vmem:[%s7112_s5 + $0xf8] sm:$0xff] }
 0x874   :  { %5304 = vmatprep.subr.bf16.mxu0 %v5303_v4  ;;  %v4349_v19 = vsel %vm859_vm2, %v3821_v28, %v4242_v27  ;;  %v4529_v27 = vld [vmem:[%s7112_s5 + $0x78] sm:$0xff] }
 0x875   :  { %v4353_v56 = vsel %vm47_vm0, %v4349_v19, %v4258_v17  ;;  %v4639_v17 = vld [vmem:[%s7113_s6] sm:$0xff] }
 0x876   :  { %4309 = vrot.lane.b32.xlu1 %v4098_v29, %s5560_s17  ;;  %v4358_v25 = vsel %vm4357_vm6, %v4353_v56, %v4274_v8 }
 0x877   :  { %4327 = vrot.lane.b32.xlu0 %v4235_v36, %s5561_s28  ;;  %5306 = vmatpush3.bf16.msra.mxu0 %v5305_v48  ;;  %v4244_v34 = vpop.permute.xlu0 %4243  ;;  %v4246_v36 = vpop.permute.xlu1 %4245 }
 0x878   :  { %5308 = vmatprep.subr.bf16.mxu0 %v5307_v21  ;;  %v4350_v32 = vsel %vm859_vm2, %v3957_v1, %v4244_v34 }
 0x87a   :  { %4325 = vrot.lane.b32.xlu1 %v4099_v58, %s5561_s28 }
 0x87b   :  { %5310 = vmatpush3.bf16.msra.mxu0 %v5309_v11  ;;  %v4260_v29 = vpop.permute.xlu0 %4259  ;;  %v4262_v3 = vpop.permute.xlu1 %4261 }
 0x87c   :  { %5312 = vmatprep.subr.bf16.mxu0 %v5311_v26  ;;  %v4354_v55 = vsel %vm47_vm0, %v4350_v32, %v4260_v29  ;;  %v4640_v29 = vld [vmem:[%s7113_s6 + $0x8] sm:$0xff] }
 0x87d   :  { %v5327_v8 = vpack.c.bf16 %v4640_v29, %v4639_v17  ;;  %v4649_v17 = vsub.s32 4, %v7134_v45 }
 0x87e   :  { %4341 = vrot.lane.b32.xlu1 %v4100_v0, %s5562_s11 }
 0x87f   :  { %5314 = vmatpush3.bf16.msra.mxu0 %v5313_v38  ;;  %v4276_v33 = vpop.permute.xlu0 %4275  ;;  %v4278_v30 = vpop.permute.xlu1 %4277  ;;  %5328 = vmatprep.subr.bf16.mxu1 %v5327_v8 }
 0x880   :  { %5316 = vmatprep.subr.bf16.mxu0 %v5315_v16  ;;  %v4359_v28 = vsel %vm4357_vm6, %v4354_v55, %v4276_v33  ;;  %v4399_v33 = vsub.s32 2, %v7134_v45 }
 0x882   :  { %4311 = vrot.lane.b32.xlu1 %v4234_v43, %s5560_s17 }
 0x883   :  { %5318 = vmatpush3.bf16.msra.mxu0 %v5317_v62  ;;  %v4248_v58 = vpop.permute.xlu0 %4247  ;;  %v5323_v62 = vpack.c.bf16 %v4545_v31, %v4544_v10 }
 0x884   :  { %5320 = vmatprep.subr.bf16.mxu0 %v5319_v57  ;;  %v4352_v22 = vsel %vm859_vm2, %v4229_v52, %v4248_v58  ;;  %v4528_v57 = vld [vmem:[%s7112_s5 + $0x70] sm:$0xff] }
 0x885   :  { %v5325_v34 = vpack.c.bf16 %v4529_v27, %v4528_v57 }
 0x886   :  { %4343 = vrot.lane.b32.xlu1 %v4236_v53, %s5562_s11  ;;  %v4351_v53 = vsel %vm859_vm2, %v4093_v7, %v4246_v36  ;;  %v7062_v36 = vld [vmem:[%s7109_s7] sm:$0x1f] }
 0x887   :  { %v4264_v5 = vpop.permute.xlu0 %4263  ;;  %v4355_v21 = vsel %vm47_vm0, %v4351_v53, %v4262_v3  ;;  %v4400_v58 = vrot.slane %v7062_v36, %v4399_v33  ;;  %v5542_v3 = vld [vmem:[%s7109_s7 + $0x8] sm:$0x1f]  ;;  %v4650_v29 = vrot.slane %v7062_v36, %v4649_v17 }
 0x888   :  { %v4360_v59 = vsel %vm4357_vm6, %v4355_v21, %v4278_v30  ;;  %v4356_v7 = vsel %vm47_vm0, %v4352_v22, %v4264_v5  ;;  %v4404_v5 = vrot.slane %v5542_v3, %v4399_v33  ;;  %v4643_v21 = vld [vmem:[%s7113_s6 + $0x20] sm:$0xff] }
 0x88b   :  { %v4280_v0 = vpop.permute.xlu0 %4279 }
 0x88c   :  { %v4361_v37 = vsel %vm4357_vm6, %v4356_v7, %v4280_v0 }
 0x8d4   :  { %v4290_v15 = vpop.permute.xlu1 %4289 }
 0x8d5   :  { %v4292_v14 = vpop.permute.xlu0 %4291  ;;  %v4362_v60 = vsel %vm1604_vm3, %v4358_v25, %v4290_v15 }
 0x8d6   :  { %v4363_v43 = vsel %vm1604_vm3, %v4359_v28, %v4292_v14 }
 0x8d8   :  { %v4306_v9 = vpop.permute.xlu1 %4305 }
 0x8d9   :  { %v4308_v61 = vpop.permute.xlu0 %4307  ;;  %v4367_v20 = vsel %vm4366_vm7, %v4362_v60, %v4306_v9 }
 0x8da   :  { %v4368_v63 = vsel %vm4366_vm7, %v4363_v43, %v4308_v61 }
 0x8dc   :  { %v4322_v2 = vpop.permute.xlu1 %4321 }
 0x8dd   :  { %v4324_v44 = vpop.permute.xlu0 %4323  ;;  %v4372_v4 = vsel %vm4371_vm8, %v4367_v20, %v4322_v2 }
 0x8de   :  { %v4373_v23 = vsel %vm4371_vm8, %v4368_v63, %v4324_v44 }
 0x8e0   :  { %v4338_v39 = vpop.permute.xlu1 %4337 }
 0x8e1   :  { %v4377_v1 = vsel %vm4376_vm9, %v4372_v4, %v4338_v39  ;;  %v4340_v49 = vpop.permute.xlu0 %4339 }
 0x8e2   :  { %4877 = vmatmul.mubr.msk.f32.vlgmr.msra.gmra.mrb[34].mxu1 %vm253_vm1, %v4377_v1  ;;  %v4378_v42 = vsel %vm4376_vm9, %v4373_v23, %v4340_v49 }
 0x8e3   :  { %4487 = vmatprep.mubr.f32.mxu1 %v7127_v24  ;;  %5330 = vmatpush3.bf16.msra.mxu1 %v5327_v8 }
 0x8e4   :  { %v4294_v47 = vpop.permute.xlu1 %4293 }
 0x8e5   :  { %v4364_v12 = vsel %vm1604_vm3, %v4360_v59, %v4294_v47  ;;  %v4296_v50 = vpop.permute.xlu0 %4295  ;;  %v4641_v47 = vld [vmem:[%s7113_s6 + $0x10] sm:$0xff] }
 0x8e6   :  { %4878 = vmatmul.mubr.msk.f32.gmra.mrb[36].mxu1 %vm253_vm1, %v4378_v42  ;;  %v4365_v18 = vsel %vm1604_vm3, %v4361_v37, %v4296_v50 }
 0x8e7   :  { %4493 = vmatprep.mubr.f32.mxu1 %v7127_v24 }
 0x8e8   :  { %v4310_v48 = vpop.permute.xlu1 %4309 }
 0x8e9   :  { %v4369_v51 = vsel %vm4366_vm7, %v4364_v12, %v4310_v48  ;;  %v4328_v16 = vpop.permute.xlu0 %4327  ;;  %v4642_v48 = vld [vmem:[%s7113_s6 + $0x18] sm:$0xff]  ;;  %v4645_v12 = vld [vmem:[%s7113_s6 + $0x30] sm:$0xff] }
 0x8ea   :  { %v5331_v53 = vpack.c.bf16 %v4642_v48, %v4641_v47 }
 0x8ec   :  { %v4326_v41 = vpop.permute.xlu1 %4325  ;;  %5332 = vmatprep.subr.bf16.mxu1 %v5331_v53 }
 0x8ed   :  { %v4374_v11 = vsel %vm4371_vm8, %v4369_v51, %v4326_v41  ;;  %5334 = vmatpush3.bf16.msra.mxu1 %v5331_v53  ;;  %v4644_v41 = vld [vmem:[%s7113_s6 + $0x28] sm:$0xff]  ;;  %v4646_v51 = vld [vmem:[%s7113_s6 + $0x38] sm:$0xff] }
 0x8ee   :  { %v5335_v59 = vpack.c.bf16 %v4644_v41, %v4643_v21 }
 0x8f0   :  { %v4342_v26 = vpop.permute.xlu1 %4341  ;;  %5336 = vmatprep.subr.bf16.mxu1 %v5335_v59 }
 0x8f1   :  { %v4379_v46 = vsel %vm4376_vm9, %v4374_v11, %v4342_v26  ;;  %5338 = vmatpush3.bf16.msra.mxu1 %v5335_v59  ;;  %v5339_v11 = vpack.c.bf16 %v4646_v51, %v4645_v12  ;;  %v4548_v26 = vsub.s32 3, %v7134_v45 }
 0x8f2   :  { %4879 = vmatmul.mubr.msk.f32.gmra.mrb[38].mxu1 %vm253_vm1, %v4379_v46 }
 0x8f3   :  { %4499 = vmatprep.mubr.f32.mxu1 %v7127_v24  ;;  %v4527_v24 = vld [vmem:[%s7112_s5 + $0x68] sm:$0xff]  ;;  %5340 = vmatprep.subr.bf16.mxu1 %v5339_v11  ;;  %v4549_v50 = vrot.slane %v7062_v36, %v4548_v26 }
 0x8f4   :  { %v4312_v6 = vpop.permute.xlu1 %4311  ;;  %v5321_v13 = vpack.c.bf16 %v4527_v24, %v4526_v54 }
 0x8f5   :  { %v4370_v38 = vsel %vm4366_vm7, %v4365_v18, %v4312_v6  ;;  %5342 = vmatpush3.bf16.msra.mxu1 %v5339_v11 }
 0x8f6   :  { %v4375_v40 = vsel %vm4371_vm8, %v4370_v38, %v4328_v16  ;;  %5322 = vmatpush3.bf16.msra.mxu0 %v5321_v13 }
 0x8f7   :  { %5324 = vmatprep.subr.bf16.mxu0 %v5323_v62 }
 0x8f8   :  { %v4344_v35 = vpop.permute.xlu1 %4343 }
 0x8f9   :  { %v4380_v52 = vsel %vm4376_vm9, %v4375_v40, %v4344_v35 }
 0x8fa   :  { %4880 = vmatmul.mubr.msk.f32.gmra.mrb[40].mxu1 %vm253_vm1, %v4380_v52  ;;  %5326 = vmatpush3.bf16.msra.mxu0 %v5325_v34 }
 0x9b5   :  { %v4483_v30 = vpop.f32.mrb[34].mxu1 }
 0x9b6   :  { %v4484_v0 = vadd.f32 %v4483_v30, %v4400_v58  ;;  %v4485_v15 = vpop.f32.mrb[35].mxu1 }
 0x9b7   :  { %v4486_v14 = vadd.f32 %v4485_v15, %v4404_v5 }
 0x9b8   :  { %v4506_v61 = vmax.f32 %v4484_v0, 0.0 }
 0x9b9   :  { %v4507_v19 = vmax.f32 %v4486_v14, 0.0  ;;  %v4489_v9 = vpop.f32.mrb[36].mxu1 }
 0x9ba   :  { %v4490_v56 = vadd.f32 %v4489_v9, %v4400_v58  ;;  %v4491_v2 = vpop.f32.mrb[37].mxu1 }
 0x9bb   :  { %v4492_v32 = vadd.f32 %v4491_v2, %v4404_v5  ;;  %4614 = vmatprep.mubr.f32.mxu0 %v4507_v19 }
 0x9bc   :  { %4615 = vmatmul.mubr.f32.vlgmr.msra.gmra.mrb[30].mxu0 %v4506_v61  ;;  %v4508_v44 = vmax.f32 %v4490_v56, 0.0 }
 0x9bd   :  { %v4509_v25 = vmax.f32 %v4492_v32, 0.0 }
 0x9bf   :  { %4619 = vmatprep.mubr.f32.mxu0 %v4509_v25 }
 0x9c0   :  { %4620 = vmatmul.mubr.f32.gmra.mrb[32].mxu0 %v4508_v44 }
 0x9c5   :  { %v4495_v55 = vpop.f32.mrb[38].mxu1 }
 0x9c6   :  { %v4496_v60 = vadd.f32 %v4495_v55, %v4400_v58  ;;  %v4497_v28 = vpop.f32.mrb[39].mxu1 }
 0x9c7   :  { %v4498_v20 = vadd.f32 %v4497_v28, %v4404_v5 }
 0x9c8   :  { %v4510_v4 = vmax.f32 %v4496_v60, 0.0 }
 0x9c9   :  { %v4511_v43 = vmax.f32 %v4498_v20, 0.0 }
 0x9cb   :  { %4624 = vmatprep.mubr.f32.mxu0 %v4511_v43 }
 0x9cc   :  { %4625 = vmatmul.mubr.f32.gmra.mrb[34].mxu0 %v4510_v4 }
 0x9cd   :  { %v4501_v39 = vpop.f32.mrb[40].mxu1 }
 0x9ce   :  { %v4502_v63 = vadd.f32 %v4501_v39, %v4400_v58  ;;  %v4503_v1 = vpop.f32.mrb[41].mxu1 }
 0x9cf   :  { %v4504_v49 = vadd.f32 %v4503_v1, %v4404_v5 }
 0x9d0   :  { %v4512_v42 = vmax.f32 %v4502_v63, 0.0 }
 0x9d1   :  { %v4513_v23 = vmax.f32 %v4504_v49, 0.0 }
 0x9d3   :  { %4629 = vmatprep.mubr.f32.mxu0 %v4513_v23 }
 0x9d4   :  { %4630 = vmatmul.mubr.f32.gmra.mrb[36].mxu0 %v4512_v42 }
 0xa8f   :  { %v4997_v22 = vpop.f32.mrb[30].mxu0 }
 0xa90   :  { %v4998_v46 = vpop.f32.mrb[31].mxu0 }
 0xa91   :  { %v4999_v7 = vadd.f32 %v4998_v46, %v4997_v22 }
 0xa93   :  { %v4617_v37 = vadd.f32 %v4999_v7, %v4549_v50  ;;  %v5000_v18 = vpop.f32.mrb[32].mxu0 }
 0xa94   :  { %v5001_v6 = vpop.f32.mrb[33].mxu0 }
 0xa95   :  { %v4635_v38 = vmax.f32 %v4617_v37, 0.0  ;;  %v5002_v16 = vadd.f32 %v5001_v6, %v5000_v18 }
 0xa97   :  { %v4622_v35 = vadd.f32 %v5002_v16, %v4549_v50  ;;  %5189 = vmatprep.mubr.msk.f32.mxu1 %vm253_vm1, %v4635_v38 }
 0xa99   :  { %v4636_v40 = vmax.f32 %v4622_v35, 0.0 }
 0xa9b   :  { %5190 = vmatmul.mubr.msk.f32.vlgmr.msra.gmra.mrb[42].mxu1 %vm253_vm1, %v4636_v40 }
 0xa9f   :  { %v5003_v52 = vpop.f32.mrb[34].mxu0 }
 0xaa0   :  { %v5004_v54 = vpop.f32.mrb[35].mxu0 }
 0xaa1   :  { %v5005_v24 = vadd.f32 %v5004_v54, %v5003_v52 }
 0xaa3   :  { %v4627_v13 = vadd.f32 %v5005_v24, %v4549_v50 }
 0xaa5   :  { %v4637_v10 = vmax.f32 %v4627_v13, 0.0 }
 0xaa7   :  { %v5006_v31 = vpop.f32.mrb[36].mxu0  ;;  %5192 = vmatprep.mubr.msk.f32.mxu1 %vm253_vm1, %v4637_v10 }
 0xaa8   :  { %v5007_v62 = vpop.f32.mrb[37].mxu0 }
 0xaa9   :  { %v5008_v57 = vadd.f32 %v5007_v62, %v5006_v31 }
 0xaab   :  { %v4632_v27 = vadd.f32 %v5008_v57, %v4549_v50 }
 0xaad   :  { %v4638_v34 = vmax.f32 %v4632_v27, 0.0 }
 0xaaf   :  { %5193 = vmatmul.mubr.msk.f32.gmra.mrb[44].mxu1 %vm253_vm1, %v4638_v34 }
 0xb6e   :  { %v5191_v8 = vpop.f32.mrb[42].mxu1 }
 0xb6f   :  { %v4735_v33 = vadd.f32 %v5191_v8, %v4650_v29  ;;  %v4729_v58 = vpop.f32.mrb[43].mxu1 }
 0xb70   :  { %v4730_v3 = vadd.f32 %v4729_v58, %v4650_v29 }
 0xb71   :  { %4750 = vst.msk [vmem:[%s7114_s8 + $0x8] sm:$0xff] %vm4748_vm10, %v4735_v33 }
 0xb72   :  { %4749 = vst.msk [vmem:[%s7114_s8] sm:$0xff] %vm4748_vm10, %v4730_v3 }
 0xb82   :  { %v5194_v5 = vpop.f32.mrb[44].mxu1 }
 0xb83   :  { %v4745_v30 = vadd.f32 %v5194_v5, %v4650_v29  ;;  %v4739_v0 = vpop.f32.mrb[45].mxu1 }
 0xb84   :  { %v4740_v15 = vadd.f32 %v4739_v0, %v4650_v29 }
 0xb85   :  { %4752 = vst.msk [vmem:[%s7114_s8 + $0x18] sm:$0xff] %vm4748_vm10, %v4745_v30 }
 0xb86   :  { %4751 = vst.msk [vmem:[%s7114_s8 + $0x10] sm:$0xff] %vm4748_vm10, %v4740_v15 }

</bundles_post_ra>
